<compile_context>
chip_gen: v5e
topology: v5e:2x2
jax: 0.10.0
libtpu: 0.0.40
codegen_flags: <defaults>
</compile_context>

<pallas_src>
import jax
import jax.numpy as jnp
from jax.experimental import pallas as pl
from jax.experimental.pallas import tpu as pltpu

C_IN = 128                      # dim_in == dim_out == 128
T_IN, T_HID, T_MID, T_OUT = 3, 32, 64, 128
EPS = 1e-5                      # GroupNorm default eps

# packed 1x1-conv weight-stack indices (bf16, each zero-padded to 128x128) ----
W_CONV, W_T2, W_T3, W_DOWN = 0, 1, 2, 3
NUM_W = 4
# packed f32 bias / gamma / beta / t1-weight-row indices ----------------------
ROW_CONV_B = 0
ROW_T1_W0, ROW_T1_W1, ROW_T1_W2 = 1, 2, 3
ROW_T1_B, ROW_T1_G, ROW_T1_BE = 4, 5, 6
ROW_T2_B, ROW_T2_G, ROW_T2_BE = 7, 8, 9
ROW_T3_B, ROW_T3_G, ROW_T3_BE = 10, 11, 12
ROW_DOWN_B = 13
VEC_ROWS = 16                   # padded to a sublane multiple


def _prelu(y, a):
    return jnp.where(y > 0, y, a * y)


def _make_kernel(tb, v):
    """Kernel over one block of `tb` samples (M = tb*v rows, 128 lanes)."""
    m = tb * v

    def kernel(x_ref, t_ref, w_ref, vec_ref, prelu_ref, out_ref):
        # 0/1 sample selector (tb, m): sel[s, r] = 1 iff row r belongs to
        # sample s.  Used to do the GroupNorm per-sample reductions on the MXU.
        r_id = jax.lax.broadcasted_iota(jnp.int32, (tb, m), 1)
        s_id = jax.lax.broadcasted_iota(jnp.int32, (tb, m), 0)
        sel = jnp.where((r_id >= s_id * v) & (r_id < (s_id + 1) * v),
                        1.0, 0.0).astype(jnp.bfloat16)

        def vrow(r):                                # static (1, 128) f32 slice
            return vec_ref[r:r + 1, :]

        def group_norm(y, valid_cols, gamma=None, beta=None):
            # nn.GroupNorm(1, C): per-sample stats over (C, V); per-channel
            # affine.  sum(y) / sum(y*y) per sample/channel via two small bf16
            # MXU dots; only the short (tb,128)->(tb,1) lane reduce hits the
            # XLU.  Stats math stays f32 (MXU accumulates f32).
            s1 = jnp.dot(sel, y.astype(jnp.bfloat16),
                         preferred_element_type=jnp.float32)       # (tb, 128)
            s2 = jnp.dot(sel, (y * y).astype(jnp.bfloat16),
                         preferred_element_type=jnp.float32)       # (tb, 128)
            s1 = jnp.sum(s1, axis=1, keepdims=True).reshape(tb, 1, 1)
            s2 = jnp.sum(s2, axis=1, keepdims=True).reshape(tb, 1, 1)
            inv_cnt = 1.0 / float(v * valid_cols)
            mu = s1 * inv_cnt
            var = jnp.maximum(s2 * inv_cnt - mu * mu, 0.0)  # one-pass guard
            inv = jax.lax.rsqrt(var + EPS)
            yn = ((y.reshape(tb, v, C_IN) - mu) * inv).reshape(m, C_IN)
            if gamma is not None:
                # zero-padded gamma/beta also re-zero any padded lanes.
                yn = yn * gamma + beta
            return yn

        xm = x_ref[...]                             # (m, 128) bf16
        tm = t_ref[...]                             # (m, 3)   f32 (no padding)

        # self.conv : 1x1 Conv2d(128,128) == per-row channel matmul (+ bias).
        xc = jnp.dot(xm, w_ref[W_CONV],
                     preferred_element_type=jnp.float32) + vrow(ROW_CONV_B)

        # NOTE: the reference computes h = self.norm(torch.bmm(x, A)) and then
        # never uses h, so that path (bmm + GroupNorm + extra output) is elided.
        # A is still accepted by the wrapper for interface parity.

        # tcn layer 1: Conv2d(3,32,1) as three broadcast FMAs on the VPU
        # (K=3 is not worth an MXU pass; its weight rows live in the vec tile,
        # zero-padded to 128 lanes so the result stays lane-dense with zero
        # padded lanes).
        y = (tm[:, 0:1] * vrow(ROW_T1_W0)
             + tm[:, 1:2] * vrow(ROW_T1_W1)
             + tm[:, 2:3] * vrow(ROW_T1_W2)
             + vrow(ROW_T1_B))
        y = _prelu(group_norm(y, T_HID, vrow(ROW_T1_G), vrow(ROW_T1_BE)),
                   prelu_ref[0])
        # tcn layer 2: Conv2d(32,64,1) (weights zero-padded to 128x128)
        y = jnp.dot(y.astype(jnp.bfloat16), w_ref[W_T2],
                    preferred_element_type=jnp.float32) + vrow(ROW_T2_B)
        y = _prelu(group_norm(y, T_MID, vrow(ROW_T2_G), vrow(ROW_T2_BE)),
                   prelu_ref[1])
        # tcn layer 3: Conv2d(64,128,1)
        y = jnp.dot(y.astype(jnp.bfloat16), w_ref[W_T3],
                    preferred_element_type=jnp.float32) + vrow(ROW_T3_B)
        y = _prelu(group_norm(y, T_OUT, vrow(ROW_T3_G), vrow(ROW_T3_BE)),
                   prelu_ref[2])

        # x += t ; x = self.norm(x) ; x = self.downsample(x)
        # The final norm's affine is folded into W_DOWN / down_b at pack time.
        z = group_norm(xc + y, C_IN)
        # TODO(synk): reference declares `self.downsample = nn.Conv2d()` (no
        # args, invalid); implemented as a deterministic 1x1 Conv2d(128,128).
        out_ref[...] = jnp.dot(z.astype(jnp.bfloat16), w_ref[W_DOWN],
                               preferred_element_type=jnp.float32) + vrow(ROW_DOWN_B)

    return kernel


def _pack_params(p):
    """Pack all 128x128 1x1-conv weights into one (4,128,128) bf16 stack and
    all vectors (biases, gammas, betas, the 3x128 t1 weight rows, folded
    downsample bias) into one zero-padded (16,128) f32 tile: two small,
    grid-invariant DMA streams."""
    f32 = lambda a: jnp.asarray(a, jnp.float32)

    # Fold the final GroupNorm affine into the downsample 1x1 conv:
    #   (zn*g + b) @ Wd + bd == zn @ (g[:,None]*Wd) + (b @ Wd + bd)
    g, b = f32(p["norm_g"]), f32(p["norm_b"])
    down_w = g[:, None] * f32(p["down_w"])
    down_b = b @ f32(p["down_w"]) + f32(p["down_b"])

    def pad_w(w):
        w = f32(w)
        r, c = w.shape
        return jnp.pad(w, ((0, C_IN - r), (0, C_IN - c)))

    wstack = jnp.stack([pad_w(p["conv_w"]), pad_w(p["t2_w"]),
                        pad_w(p["t3_w"]), pad_w(down_w)]).astype(jnp.bfloat16)

    def pad_v(vec):
        vec = jnp.reshape(f32(vec), (-1,))
        return jnp.pad(vec, (0, C_IN - vec.shape[0]))

    t1_w = f32(p["t1_w"])                           # (3, 32)
    rows = [p["conv_b"],
            t1_w[0], t1_w[1], t1_w[2],
            p["t1_b"], p["t1_g"], p["t1_be"],
            p["t2_b"], p["t2_g"], p["t2_be"],
            p["t3_b"], p["t3_g"], p["t3_be"],
            down_b]
    vecs = jnp.stack([pad_v(r) for r in rows])
    vecs = jnp.pad(vecs, ((0, VEC_ROWS - vecs.shape[0]), (0, 0)))
    return wstack, vecs


def _pick_block_samples(n, v, target_rows=1024):
    """Largest divisor of n giving <= target_rows rows per block, capped at
    n//2 so the 'parallel' grid has >=2 steps (v7x has 2 TensorCores)."""
    if n <= 1:
        return 1
    cap = max(1, min(n // 2, max(1, target_rows // v)))
    bs = 1
    for d in range(1, cap + 1):
        if n % d == 0:
            bs = d
    return bs


def actor_stgcn_channels_last(t_nvc, x_nvc, A, params, *, block_samples=None):
    """Fast path (channels-last): t (N,V,3), x (N,V,128), A (N,V,V, unused).
    Returns (N,V,128).  No boundary transposes; pass bf16 x to also skip the
    cast pass."""
    del A          # h = norm(bmm(conv(x), A)) is dead code in the reference.
    n, v, c = x_nvc.shape
    assert c == C_IN and v % 8 == 0
    assert t_nvc.shape == (n, v, T_IN)
    if block_samples is None:
        block_samples = _pick_block_samples(n, v)
    assert n % block_samples == 0
    m_blk, m_tot = block_samples * v, n * v

    x2 = x_nvc.reshape(m_tot, C_IN).astype(jnp.bfloat16)   # lanes = channels
    t2 = t_nvc.reshape(m_tot, T_IN).astype(jnp.float32)    # (M, 3), unpadded
    wstack, vecs = _pack_params(params)
    prelu_a = jnp.asarray(params["prelu_a"], jnp.float32)

    cost = pl.CostEstimate(
        flops=int(4 * 2 * m_tot * C_IN * C_IN          # conv, t2, t3, down dots
                  + 8 * 2 * n * m_blk * C_IN),         # GN stat dots
        transcendentals=int(4 * n),                     # one rsqrt per GN/sample
        bytes_accessed=int(x2.size * 2 + t2.size * 4 + wstack.size * 2
                           + vecs.size * 4 + prelu_a.size * 4
                           + m_tot * C_IN * 4))

    out2 = pl.pallas_call(
        _make_kernel(block_samples, v),
        out_shape=jax.ShapeDtypeStruct((m_tot, C_IN), jnp.float32),
        grid=(n // block_samples,),
        in_specs=[
            pl.BlockSpec((m_blk, C_IN), lambda i: (i, 0)),            # x (bf16)
            pl.BlockSpec((m_blk, T_IN), lambda i: (i, 0)),            # t (f32, 3 lanes)
            # grid-invariant operands: constant index_map -> fetched once.
            pl.BlockSpec((NUM_W, C_IN, C_IN), lambda i: (0, 0, 0)),   # weight stack
            pl.BlockSpec((VEC_ROWS, C_IN), lambda i: (0, 0)),         # bias/gamma/beta
            pl.BlockSpec(memory_space=pltpu.MemorySpace.SMEM),        # prelu slopes
        ],
        out_specs=pl.BlockSpec((m_blk, C_IN), lambda i: (i, 0)),
        compiler_params=pltpu.CompilerParams(dimension_semantics=("parallel",)),
        cost_estimate=cost,
    )(x2, t2, wstack, vecs, prelu_a)

    return out2.reshape(n, v, C_IN)


def actor_stgcn(t_ncv, x_ncv, A, params, *, block_samples=None):
    """PyTorch-layout wrapper: t (N,3,V), x (N,128,V) -> (N,128,V).
    Each boundary transpose is one extra HBM pass done by XLA outside the
    kernel; callers with channels-last data should use
    actor_stgcn_channels_last directly."""
    out = actor_stgcn_channels_last(jnp.transpose(t_ncv, (0, 2, 1)),
                                    jnp.transpose(x_ncv, (0, 2, 1)),
                                    A, params, block_samples=block_samples)
    return jnp.transpose(out, (0, 2, 1))


def actor_stgcn_reference(t_ncv, x_ncv, A, params):
    """Pure-JAX f32 reference mirroring the PyTorch forward (h is dead code)."""
    del A

    def conv1x1(x, w, b):                       # x (N,Cin,V), w (Cin,Cout)
        return jnp.einsum("ncv,cd->ndv", x, w) + b[None, :, None]

    def gn(x, g, b):                            # GroupNorm(1, C) per sample
        mu = jnp.mean(x, axis=(1, 2), keepdims=True)
        var = jnp.mean(jnp.square(x - mu), axis=(1, 2), keepdims=True)
        return (x - mu) / jnp.sqrt(var + EPS) * g[None, :, None] + b[None, :, None]

    p = params
    xc = conv1x1(x_ncv, p["conv_w"], p["conv_b"])
    y = conv1x1(t_ncv, p["t1_w"], p["t1_b"])
    y = _prelu(gn(y, p["t1_g"], p["t1_be"]), p["prelu_a"][0])
    y = conv1x1(y, p["t2_w"], p["t2_b"])
    y = _prelu(gn(y, p["t2_g"], p["t2_be"]), p["prelu_a"][1])
    y = conv1x1(y, p["t3_w"], p["t3_b"])
    y = _prelu(gn(y, p["t3_g"], p["t3_be"]), p["prelu_a"][2])
    z = gn(xc + y, p["norm_g"], p["norm_b"])
    return conv1x1(z, p["down_w"], p["down_b"])


def init_params(key):
    """Self-consistent init (PyTorch defaults).  NOTE: 1x1-conv weights are
    stored (C_in, C_out); a real PyTorch Conv2d checkpoint stores
    (C_out, C_in, 1, 1) and must be squeezed + transposed on import."""
    ks = jax.random.split(key, 10)

    def u(k, shape, fan_in):
        bound = 1.0 / float(fan_in) ** 0.5
        return jax.random.uniform(k, shape, jnp.float32, -bound, bound)

    p = {}
    p["conv_w"] = u(ks[0], (C_IN, C_IN), C_IN)          # Conv2d(128,128,1)
    p["conv_b"] = u(ks[1], (C_IN,), C_IN)
    p["norm_g"] = jnp.ones((C_IN,), jnp.float32)        # GroupNorm(1,128)
    p["norm_b"] = jnp.zeros((C_IN,), jnp.float32)
    p["t1_w"] = u(ks[2], (T_IN, T_HID), T_IN)           # Conv2d(3,32,1)
    p["t1_b"] = u(ks[3], (T_HID,), T_IN)
    p["t1_g"] = jnp.ones((T_HID,), jnp.float32)
    p["t1_be"] = jnp.zeros((T_HID,), jnp.float32)
    p["t2_w"] = u(ks[4], (T_HID, T_MID), T_HID)         # Conv2d(32,64,1)
    p["t2_b"] = u(ks[5], (T_MID,), T_HID)
    p["t2_g"] = jnp.ones((T_MID,), jnp.float32)
    p["t2_be"] = jnp.zeros((T_MID,), jnp.float32)
    p["t3_w"] = u(ks[6], (T_MID, T_OUT), T_MID)         # Conv2d(64,128,1)
    p["t3_b"] = u(ks[7], (T_OUT,), T_MID)
    p["t3_g"] = jnp.ones((T_OUT,), jnp.float32)
    p["t3_be"] = jnp.zeros((T_OUT,), jnp.float32)
    p["prelu_a"] = jnp.full((3,), 0.25, jnp.float32)    # nn.PReLU() default
    # TODO(synk): `self.downsample = nn.Conv2d()` is invalid in the reference;
    # modeled as a deterministic 1x1 Conv2d(128,128).
    p["down_w"] = u(ks[8], (C_IN, C_IN), C_IN)
    p["down_b"] = u(ks[9], (C_IN,), C_IN)
    return p


if __name__ == "__main__":
    key = jax.random.PRNGKey(0)
    kx, kt, ka, kp, kg = jax.random.split(key, 5)

    n, v = 8, 16                                 # small demo; grid = 2 blocks
    x = jax.random.normal(kx, (n, C_IN, v), jnp.float32)   # (N, 128, V)
    t = jax.random.normal(kt, (n, T_IN, v), jnp.float32)   # (N, 3, V)
    A = jax.random.normal(ka, (n, v, v), jnp.float32)      # unused (dead path)
    params = init_params(kp)
    # perturb some GroupNorm affines so the affine-fold / padded-lane paths are
    # actually exercised by the self-check (PyTorch init is all ones/zeros).
    kg1, kg2, kg3, kg4 = jax.random.split(kg, 4)
    params["norm_g"] = 1.0 + 0.1 * jax.random.normal(kg1, (C_IN,), jnp.float32)
    params["norm_b"] = 0.1 * jax.random.normal(kg2, (C_IN,), jnp.float32)
    params["t2_g"] = 1.0 + 0.1 * jax.random.normal(kg3, (T_MID,), jnp.float32)
    params["t2_be"] = 0.1 * jax.random.normal(kg4, (T_MID,), jnp.float32)

    out = actor_stgcn(t, x, A, params)                      # PyTorch layout
    jax.block_until_ready(out)
    assert out.shape == (n, C_IN, v)

    # channels-last fast path (no boundary transposes) must agree.
    out_cl = actor_stgcn_channels_last(jnp.transpose(t, (0, 2, 1)),
                                       jnp.transpose(x, (0, 2, 1)), A, params)
    jax.block_until_ready(out_cl)
    assert jnp.allclose(out, jnp.transpose(out_cl, (0, 2, 1)))

    # f32 reference check (tolerance covers bf16 MXU operands / bf16 GN stats).
    ref = actor_stgcn_reference(t, x, A, params)
    max_err = float(jnp.max(jnp.abs(out - ref)))
    assert max_err < 0.1, f"max abs err {max_err}"
    print("KERNEL_OK")
</pallas_src>

<mosaic_0001>
module attributes {stable_mosaic.version = 11 : i64} {
  func.func @kernel(%arg0: i32, %arg1: memref<64x128xbf16, #tpu.memory_space<vmem>>, %arg2: memref<64x3xf32, #tpu.memory_space<vmem>>, %arg3: memref<4x128x128xbf16, #tpu.memory_space<vmem>>, %arg4: memref<16x128xf32, #tpu.memory_space<vmem>>, %arg5: memref<3xf32, #tpu.memory_space<smem>>, %arg6: memref<64x128xf32, #tpu.memory_space<vmem>>) attributes {dimension_semantics = [#tpu.dimension_semantics<parallel>], iteration_bounds = array<i64: 2>, scalar_prefetch = 0 : i64, scratch_operands = 0 : i64, tpu.core_type = #tpu.core_type<tc>, window_params = [{transform_indices = @transform_0, window_bounds = array<i64: 64, 128>}, {transform_indices = @transform_1, window_bounds = array<i64: 64, 3>}, {pipeline_mode = #tpu.pipeline_mode<synchronous>, transform_indices = @transform_2, window_bounds = array<i64: 4, 128, 128>}, {pipeline_mode = #tpu.pipeline_mode<synchronous>, transform_indices = @transform_3, window_bounds = array<i64: 16, 128>}, {transform_indices = @transform_4, window_bounds = array<i64: 3>}, {transform_indices = @transform_5, window_bounds = array<i64: 64, 128>}]} {
    %0 = tpu.iota {dimensions = array<i32: 1>} : vector<4x64xi32>
    %1 = tpu.iota {dimensions = array<i32: 0>} : vector<4x64xi32>
    %c16_i32 = arith.constant 16 : i32
    %2 = vector.broadcast %c16_i32 : i32 to vector<4x64xi32>
    %3 = arith.muli %1, %2 : vector<4x64xi32>
    %4 = arith.cmpi sge, %0, %3 : vector<4x64xi32>
    %c1_i32 = arith.constant 1 : i32
    %5 = vector.broadcast %c1_i32 : i32 to vector<4x64xi32>
    %6 = arith.addi %1, %5 : vector<4x64xi32>
    %c16_i32_0 = arith.constant 16 : i32
    %7 = vector.broadcast %c16_i32_0 : i32 to vector<4x64xi32>
    %8 = arith.muli %6, %7 : vector<4x64xi32>
    %9 = arith.cmpi slt, %0, %8 : vector<4x64xi32>
    %10 = arith.andi %4, %9 : vector<4x64xi1>
    %cst = arith.constant 1.000000e+00 : f32
    %cst_1 = arith.constant 0.000000e+00 : f32
    %11 = vector.broadcast %cst : f32 to vector<4x64xf32>
    %12 = vector.broadcast %cst_1 : f32 to vector<4x64xf32>
    %13 = arith.select %10, %11, %12 : vector<4x64xi1>, vector<4x64xf32>
    %14 = arith.truncf %13 : vector<4x64xf32> to vector<4x64xbf16>
    %c0 = arith.constant 0 : index
    %c0_2 = arith.constant 0 : index
    %15 = vector.load %arg1[%c0, %c0_2] : memref<64x128xbf16, #tpu.memory_space<vmem>>, vector<64x128xbf16>
    %c0_3 = arith.constant 0 : index
    %c0_4 = arith.constant 0 : index
    %16 = vector.load %arg2[%c0_3, %c0_4] : memref<64x3xf32, #tpu.memory_space<vmem>>, vector<64x3xf32>
    %c0_5 = arith.constant 0 : index
    %c0_6 = arith.constant 0 : index
    %c0_7 = arith.constant 0 : index
    %17 = vector.load %arg3[%c0_5, %c0_6, %c0_7] : memref<4x128x128xbf16, #tpu.memory_space<vmem>>, vector<1x128x128xbf16>
    %18 = vector.shape_cast %17 : vector<1x128x128xbf16> to vector<128x128xbf16>
    %cst_8 = arith.constant dense<0.000000e+00> : vector<64x128xf32>
    %19 = tpu.matmul %15, %18, %cst_8 {dimension_numbers = #tpu.dot_dimension_numbers<[1], [0], [0], [1], [0, 0, 1, 1], [], []>} : vector<64x128xbf16>, vector<128x128xbf16>, vector<64x128xf32> -> vector<64x128xf32>
    %c0_9 = arith.constant 0 : index
    %c0_10 = arith.constant 0 : index
    %20 = vector.load %arg4[%c0_9, %c0_10] : memref<16x128xf32, #tpu.memory_space<vmem>>, vector<1x128xf32>
    %21 = vector.broadcast %20 : vector<1x128xf32> to vector<64x128xf32>
    %22 = arith.addf %19, %21 : vector<64x128xf32>
    %23 = vector.extract_strided_slice %16 {offsets = [0, 0], sizes = [64, 1], strides = [1, 1]} : vector<64x3xf32> to vector<64x1xf32>
    %c1 = arith.constant 1 : index
    %c0_11 = arith.constant 0 : index
    %24 = vector.load %arg4[%c1, %c0_11] : memref<16x128xf32, #tpu.memory_space<vmem>>, vector<1x128xf32>
    %25 = vector.broadcast %23 : vector<64x1xf32> to vector<64x128xf32>
    %26 = vector.broadcast %24 : vector<1x128xf32> to vector<64x128xf32>
    %27 = arith.mulf %25, %26 : vector<64x128xf32>
    %28 = vector.extract_strided_slice %16 {offsets = [0, 1], sizes = [64, 1], strides = [1, 1]} : vector<64x3xf32> to vector<64x1xf32>
    %c2 = arith.constant 2 : index
    %c0_12 = arith.constant 0 : index
    %29 = vector.load %arg4[%c2, %c0_12] : memref<16x128xf32, #tpu.memory_space<vmem>>, vector<1x128xf32>
    %30 = vector.broadcast %28 : vector<64x1xf32> to vector<64x128xf32>
    %31 = vector.broadcast %29 : vector<1x128xf32> to vector<64x128xf32>
    %32 = arith.mulf %30, %31 : vector<64x128xf32>
    %33 = arith.addf %27, %32 : vector<64x128xf32>
    %34 = vector.extract_strided_slice %16 {offsets = [0, 2], sizes = [64, 1], strides = [1, 1]} : vector<64x3xf32> to vector<64x1xf32>
    %c3 = arith.constant 3 : index
    %c0_13 = arith.constant 0 : index
    %35 = vector.load %arg4[%c3, %c0_13] : memref<16x128xf32, #tpu.memory_space<vmem>>, vector<1x128xf32>
    %36 = vector.broadcast %34 : vector<64x1xf32> to vector<64x128xf32>
    %37 = vector.broadcast %35 : vector<1x128xf32> to vector<64x128xf32>
    %38 = arith.mulf %36, %37 : vector<64x128xf32>
    %39 = arith.addf %33, %38 : vector<64x128xf32>
    %c4 = arith.constant 4 : index
    %c0_14 = arith.constant 0 : index
    %40 = vector.load %arg4[%c4, %c0_14] : memref<16x128xf32, #tpu.memory_space<vmem>>, vector<1x128xf32>
    %41 = vector.broadcast %40 : vector<1x128xf32> to vector<64x128xf32>
    %42 = arith.addf %39, %41 : vector<64x128xf32>
    %c5 = arith.constant 5 : index
    %c0_15 = arith.constant 0 : index
    %43 = vector.load %arg4[%c5, %c0_15] : memref<16x128xf32, #tpu.memory_space<vmem>>, vector<1x128xf32>
    %c6 = arith.constant 6 : index
    %c0_16 = arith.constant 0 : index
    %44 = vector.load %arg4[%c6, %c0_16] : memref<16x128xf32, #tpu.memory_space<vmem>>, vector<1x128xf32>
    %45 = arith.truncf %42 : vector<64x128xf32> to vector<64x128xbf16>
    %cst_17 = arith.constant dense<0.000000e+00> : vector<4x128xf32>
    %46 = tpu.matmul %14, %45, %cst_17 {dimension_numbers = #tpu.dot_dimension_numbers<[1], [0], [0], [1], [0, 0, 1, 1], [], []>} : vector<4x64xbf16>, vector<64x128xbf16>, vector<4x128xf32> -> vector<4x128xf32>
    %47 = arith.mulf %42, %42 : vector<64x128xf32>
    %48 = arith.truncf %47 : vector<64x128xf32> to vector<64x128xbf16>
    %cst_18 = arith.constant dense<0.000000e+00> : vector<4x128xf32>
    %49 = tpu.matmul %14, %48, %cst_18 {dimension_numbers = #tpu.dot_dimension_numbers<[1], [0], [0], [1], [0, 0, 1, 1], [], []>} : vector<4x64xbf16>, vector<64x128xbf16>, vector<4x128xf32> -> vector<4x128xf32>
    %cst_19 = arith.constant dense<0.000000e+00> : vector<4xf32>
    %50 = vector.multi_reduction <add>, %46, %cst_19 [1] : vector<4x128xf32> to vector<4xf32>
    %51 = vector.shape_cast %50 : vector<4xf32> to vector<4x1xf32>
    %52 = vector.shape_cast %51 : vector<4x1xf32> to vector<4x1x1xf32>
    %cst_20 = arith.constant dense<0.000000e+00> : vector<4xf32>
    %53 = vector.multi_reduction <add>, %49, %cst_20 [1] : vector<4x128xf32> to vector<4xf32>
    %54 = vector.shape_cast %53 : vector<4xf32> to vector<4x1xf32>
    %55 = vector.shape_cast %54 : vector<4x1xf32> to vector<4x1x1xf32>
    %cst_21 = arith.constant 0.001953125 : f32
    %56 = vector.broadcast %cst_21 : f32 to vector<4x1x1xf32>
    %57 = arith.mulf %52, %56 : vector<4x1x1xf32>
    %cst_22 = arith.constant 0.001953125 : f32
    %58 = vector.broadcast %cst_22 : f32 to vector<4x1x1xf32>
    %59 = arith.mulf %55, %58 : vector<4x1x1xf32>
    %60 = arith.mulf %57, %57 : vector<4x1x1xf32>
    %61 = arith.subf %59, %60 : vector<4x1x1xf32>
    %cst_23 = arith.constant 0.000000e+00 : f32
    %62 = vector.broadcast %cst_23 : f32 to vector<4x1x1xf32>
    %63 = arith.maximumf %61, %62 : vector<4x1x1xf32>
    %cst_24 = arith.constant 9.99999974E-6 : f32
    %64 = vector.broadcast %cst_24 : f32 to vector<4x1x1xf32>
    %65 = arith.addf %63, %64 : vector<4x1x1xf32>
    %66 = math.rsqrt %65 : vector<4x1x1xf32>
    %67 = vector.shape_cast %42 : vector<64x128xf32> to vector<4x16x128xf32>
    %68 = vector.broadcast %57 : vector<4x1x1xf32> to vector<4x16x128xf32>
    %69 = arith.subf %67, %68 : vector<4x16x128xf32>
    %70 = vector.broadcast %66 : vector<4x1x1xf32> to vector<4x16x128xf32>
    %71 = arith.mulf %69, %70 : vector<4x16x128xf32>
    %72 = vector.shape_cast %71 : vector<4x16x128xf32> to vector<64x128xf32>
    %73 = vector.broadcast %43 : vector<1x128xf32> to vector<64x128xf32>
    %74 = arith.mulf %72, %73 : vector<64x128xf32>
    %75 = vector.broadcast %44 : vector<1x128xf32> to vector<64x128xf32>
    %76 = arith.addf %74, %75 : vector<64x128xf32>
    %c0_25 = arith.constant 0 : index
    %77 = memref.load %arg5[%c0_25] : memref<3xf32, #tpu.memory_space<smem>>
    %cst_26 = arith.constant 0.000000e+00 : f32
    %78 = vector.broadcast %cst_26 : f32 to vector<64x128xf32>
    %79 = arith.cmpf ogt, %76, %78 : vector<64x128xf32>
    %80 = vector.broadcast %77 : f32 to vector<64x128xf32>
    %81 = arith.mulf %80, %76 : vector<64x128xf32>
    %82 = arith.select %79, %76, %81 : vector<64x128xi1>, vector<64x128xf32>
    %83 = arith.truncf %82 : vector<64x128xf32> to vector<64x128xbf16>
    %c1_27 = arith.constant 1 : index
    %c0_28 = arith.constant 0 : index
    %c0_29 = arith.constant 0 : index
    %84 = vector.load %arg3[%c1_27, %c0_28, %c0_29] : memref<4x128x128xbf16, #tpu.memory_space<vmem>>, vector<1x128x128xbf16>
    %85 = vector.shape_cast %84 : vector<1x128x128xbf16> to vector<128x128xbf16>
    %cst_30 = arith.constant dense<0.000000e+00> : vector<64x128xf32>
    %86 = tpu.matmul %83, %85, %cst_30 {dimension_numbers = #tpu.dot_dimension_numbers<[1], [0], [0], [1], [0, 0, 1, 1], [], []>} : vector<64x128xbf16>, vector<128x128xbf16>, vector<64x128xf32> -> vector<64x128xf32>
    %c7 = arith.constant 7 : index
    %c0_31 = arith.constant 0 : index
    %87 = vector.load %arg4[%c7, %c0_31] : memref<16x128xf32, #tpu.memory_space<vmem>>, vector<1x128xf32>
    %88 = vector.broadcast %87 : vector<1x128xf32> to vector<64x128xf32>
    %89 = arith.addf %86, %88 : vector<64x128xf32>
    %c8 = arith.constant 8 : index
    %c0_32 = arith.constant 0 : index
    %90 = vector.load %arg4[%c8, %c0_32] : memref<16x128xf32, #tpu.memory_space<vmem>>, vector<1x128xf32>
    %c9 = arith.constant 9 : index
    %c0_33 = arith.constant 0 : index
    %91 = vector.load %arg4[%c9, %c0_33] : memref<16x128xf32, #tpu.memory_space<vmem>>, vector<1x128xf32>
    %92 = arith.truncf %89 : vector<64x128xf32> to vector<64x128xbf16>
    %cst_34 = arith.constant dense<0.000000e+00> : vector<4x128xf32>
    %93 = tpu.matmul %14, %92, %cst_34 {dimension_numbers = #tpu.dot_dimension_numbers<[1], [0], [0], [1], [0, 0, 1, 1], [], []>} : vector<4x64xbf16>, vector<64x128xbf16>, vector<4x128xf32> -> vector<4x128xf32>
    %94 = arith.mulf %89, %89 : vector<64x128xf32>
    %95 = arith.truncf %94 : vector<64x128xf32> to vector<64x128xbf16>
    %cst_35 = arith.constant dense<0.000000e+00> : vector<4x128xf32>
    %96 = tpu.matmul %14, %95, %cst_35 {dimension_numbers = #tpu.dot_dimension_numbers<[1], [0], [0], [1], [0, 0, 1, 1], [], []>} : vector<4x64xbf16>, vector<64x128xbf16>, vector<4x128xf32> -> vector<4x128xf32>
    %cst_36 = arith.constant dense<0.000000e+00> : vector<4xf32>
    %97 = vector.multi_reduction <add>, %93, %cst_36 [1] : vector<4x128xf32> to vector<4xf32>
    %98 = vector.shape_cast %97 : vector<4xf32> to vector<4x1xf32>
    %99 = vector.shape_cast %98 : vector<4x1xf32> to vector<4x1x1xf32>
    %cst_37 = arith.constant dense<0.000000e+00> : vector<4xf32>
    %100 = vector.multi_reduction <add>, %96, %cst_37 [1] : vector<4x128xf32> to vector<4xf32>
    %101 = vector.shape_cast %100 : vector<4xf32> to vector<4x1xf32>
    %102 = vector.shape_cast %101 : vector<4x1xf32> to vector<4x1x1xf32>
    %cst_38 = arith.constant 9.765625E-4 : f32
    %103 = vector.broadcast %cst_38 : f32 to vector<4x1x1xf32>
    %104 = arith.mulf %99, %103 : vector<4x1x1xf32>
    %cst_39 = arith.constant 9.765625E-4 : f32
    %105 = vector.broadcast %cst_39 : f32 to vector<4x1x1xf32>
    %106 = arith.mulf %102, %105 : vector<4x1x1xf32>
    %107 = arith.mulf %104, %104 : vector<4x1x1xf32>
    %108 = arith.subf %106, %107 : vector<4x1x1xf32>
    %cst_40 = arith.constant 0.000000e+00 : f32
    %109 = vector.broadcast %cst_40 : f32 to vector<4x1x1xf32>
    %110 = arith.maximumf %108, %109 : vector<4x1x1xf32>
    %cst_41 = arith.constant 9.99999974E-6 : f32
    %111 = vector.broadcast %cst_41 : f32 to vector<4x1x1xf32>
    %112 = arith.addf %110, %111 : vector<4x1x1xf32>
    %113 = math.rsqrt %112 : vector<4x1x1xf32>
    %114 = vector.shape_cast %89 : vector<64x128xf32> to vector<4x16x128xf32>
    %115 = vector.broadcast %104 : vector<4x1x1xf32> to vector<4x16x128xf32>
    %116 = arith.subf %114, %115 : vector<4x16x128xf32>
    %117 = vector.broadcast %113 : vector<4x1x1xf32> to vector<4x16x128xf32>
    %118 = arith.mulf %116, %117 : vector<4x16x128xf32>
    %119 = vector.shape_cast %118 : vector<4x16x128xf32> to vector<64x128xf32>
    %120 = vector.broadcast %90 : vector<1x128xf32> to vector<64x128xf32>
    %121 = arith.mulf %119, %120 : vector<64x128xf32>
    %122 = vector.broadcast %91 : vector<1x128xf32> to vector<64x128xf32>
    %123 = arith.addf %121, %122 : vector<64x128xf32>
    %c1_42 = arith.constant 1 : index
    %124 = memref.load %arg5[%c1_42] : memref<3xf32, #tpu.memory_space<smem>>
    %cst_43 = arith.constant 0.000000e+00 : f32
    %125 = vector.broadcast %cst_43 : f32 to vector<64x128xf32>
    %126 = arith.cmpf ogt, %123, %125 : vector<64x128xf32>
    %127 = vector.broadcast %124 : f32 to vector<64x128xf32>
    %128 = arith.mulf %127, %123 : vector<64x128xf32>
    %129 = arith.select %126, %123, %128 : vector<64x128xi1>, vector<64x128xf32>
    %130 = arith.truncf %129 : vector<64x128xf32> to vector<64x128xbf16>
    %c2_44 = arith.constant 2 : index
    %c0_45 = arith.constant 0 : index
    %c0_46 = arith.constant 0 : index
    %131 = vector.load %arg3[%c2_44, %c0_45, %c0_46] : memref<4x128x128xbf16, #tpu.memory_space<vmem>>, vector<1x128x128xbf16>
    %132 = vector.shape_cast %131 : vector<1x128x128xbf16> to vector<128x128xbf16>
    %cst_47 = arith.constant dense<0.000000e+00> : vector<64x128xf32>
    %133 = tpu.matmul %130, %132, %cst_47 {dimension_numbers = #tpu.dot_dimension_numbers<[1], [0], [0], [1], [0, 0, 1, 1], [], []>} : vector<64x128xbf16>, vector<128x128xbf16>, vector<64x128xf32> -> vector<64x128xf32>
    %c10 = arith.constant 10 : index
    %c0_48 = arith.constant 0 : index
    %134 = vector.load %arg4[%c10, %c0_48] : memref<16x128xf32, #tpu.memory_space<vmem>>, vector<1x128xf32>
    %135 = vector.broadcast %134 : vector<1x128xf32> to vector<64x128xf32>
    %136 = arith.addf %133, %135 : vector<64x128xf32>
    %c11 = arith.constant 11 : index
    %c0_49 = arith.constant 0 : index
    %137 = vector.load %arg4[%c11, %c0_49] : memref<16x128xf32, #tpu.memory_space<vmem>>, vector<1x128xf32>
    %c12 = arith.constant 12 : index
    %c0_50 = arith.constant 0 : index
    %138 = vector.load %arg4[%c12, %c0_50] : memref<16x128xf32, #tpu.memory_space<vmem>>, vector<1x128xf32>
    %139 = arith.truncf %136 : vector<64x128xf32> to vector<64x128xbf16>
    %cst_51 = arith.constant dense<0.000000e+00> : vector<4x128xf32>
    %140 = tpu.matmul %14, %139, %cst_51 {dimension_numbers = #tpu.dot_dimension_numbers<[1], [0], [0], [1], [0, 0, 1, 1], [], []>} : vector<4x64xbf16>, vector<64x128xbf16>, vector<4x128xf32> -> vector<4x128xf32>
    %141 = arith.mulf %136, %136 : vector<64x128xf32>
    %142 = arith.truncf %141 : vector<64x128xf32> to vector<64x128xbf16>
    %cst_52 = arith.constant dense<0.000000e+00> : vector<4x128xf32>
    %143 = tpu.matmul %14, %142, %cst_52 {dimension_numbers = #tpu.dot_dimension_numbers<[1], [0], [0], [1], [0, 0, 1, 1], [], []>} : vector<4x64xbf16>, vector<64x128xbf16>, vector<4x128xf32> -> vector<4x128xf32>
    %cst_53 = arith.constant dense<0.000000e+00> : vector<4xf32>
    %144 = vector.multi_reduction <add>, %140, %cst_53 [1] : vector<4x128xf32> to vector<4xf32>
    %145 = vector.shape_cast %144 : vector<4xf32> to vector<4x1xf32>
    %146 = vector.shape_cast %145 : vector<4x1xf32> to vector<4x1x1xf32>
    %cst_54 = arith.constant dense<0.000000e+00> : vector<4xf32>
    %147 = vector.multi_reduction <add>, %143, %cst_54 [1] : vector<4x128xf32> to vector<4xf32>
    %148 = vector.shape_cast %147 : vector<4xf32> to vector<4x1xf32>
    %149 = vector.shape_cast %148 : vector<4x1xf32> to vector<4x1x1xf32>
    %cst_55 = arith.constant 4.8828125E-4 : f32
    %150 = vector.broadcast %cst_55 : f32 to vector<4x1x1xf32>
    %151 = arith.mulf %146, %150 : vector<4x1x1xf32>
    %cst_56 = arith.constant 4.8828125E-4 : f32
    %152 = vector.broadcast %cst_56 : f32 to vector<4x1x1xf32>
    %153 = arith.mulf %149, %152 : vector<4x1x1xf32>
    %154 = arith.mulf %151, %151 : vector<4x1x1xf32>
    %155 = arith.subf %153, %154 : vector<4x1x1xf32>
    %cst_57 = arith.constant 0.000000e+00 : f32
    %156 = vector.broadcast %cst_57 : f32 to vector<4x1x1xf32>
    %157 = arith.maximumf %155, %156 : vector<4x1x1xf32>
    %cst_58 = arith.constant 9.99999974E-6 : f32
    %158 = vector.broadcast %cst_58 : f32 to vector<4x1x1xf32>
    %159 = arith.addf %157, %158 : vector<4x1x1xf32>
    %160 = math.rsqrt %159 : vector<4x1x1xf32>
    %161 = vector.shape_cast %136 : vector<64x128xf32> to vector<4x16x128xf32>
    %162 = vector.broadcast %151 : vector<4x1x1xf32> to vector<4x16x128xf32>
    %163 = arith.subf %161, %162 : vector<4x16x128xf32>
    %164 = vector.broadcast %160 : vector<4x1x1xf32> to vector<4x16x128xf32>
    %165 = arith.mulf %163, %164 : vector<4x16x128xf32>
    %166 = vector.shape_cast %165 : vector<4x16x128xf32> to vector<64x128xf32>
    %167 = vector.broadcast %137 : vector<1x128xf32> to vector<64x128xf32>
    %168 = arith.mulf %166, %167 : vector<64x128xf32>
    %169 = vector.broadcast %138 : vector<1x128xf32> to vector<64x128xf32>
    %170 = arith.addf %168, %169 : vector<64x128xf32>
    %c2_59 = arith.constant 2 : index
    %171 = memref.load %arg5[%c2_59] : memref<3xf32, #tpu.memory_space<smem>>
    %cst_60 = arith.constant 0.000000e+00 : f32
    %172 = vector.broadcast %cst_60 : f32 to vector<64x128xf32>
    %173 = arith.cmpf ogt, %170, %172 : vector<64x128xf32>
    %174 = vector.broadcast %171 : f32 to vector<64x128xf32>
    %175 = arith.mulf %174, %170 : vector<64x128xf32>
    %176 = arith.select %173, %170, %175 : vector<64x128xi1>, vector<64x128xf32>
    %177 = arith.addf %22, %176 : vector<64x128xf32>
    %178 = arith.truncf %177 : vector<64x128xf32> to vector<64x128xbf16>
    %cst_61 = arith.constant dense<0.000000e+00> : vector<4x128xf32>
    %179 = tpu.matmul %14, %178, %cst_61 {dimension_numbers = #tpu.dot_dimension_numbers<[1], [0], [0], [1], [0, 0, 1, 1], [], []>} : vector<4x64xbf16>, vector<64x128xbf16>, vector<4x128xf32> -> vector<4x128xf32>
    %180 = arith.mulf %177, %177 : vector<64x128xf32>
    %181 = arith.truncf %180 : vector<64x128xf32> to vector<64x128xbf16>
    %cst_62 = arith.constant dense<0.000000e+00> : vector<4x128xf32>
    %182 = tpu.matmul %14, %181, %cst_62 {dimension_numbers = #tpu.dot_dimension_numbers<[1], [0], [0], [1], [0, 0, 1, 1], [], []>} : vector<4x64xbf16>, vector<64x128xbf16>, vector<4x128xf32> -> vector<4x128xf32>
    %cst_63 = arith.constant dense<0.000000e+00> : vector<4xf32>
    %183 = vector.multi_reduction <add>, %179, %cst_63 [1] : vector<4x128xf32> to vector<4xf32>
    %184 = vector.shape_cast %183 : vector<4xf32> to vector<4x1xf32>
    %185 = vector.shape_cast %184 : vector<4x1xf32> to vector<4x1x1xf32>
    %cst_64 = arith.constant dense<0.000000e+00> : vector<4xf32>
    %186 = vector.multi_reduction <add>, %182, %cst_64 [1] : vector<4x128xf32> to vector<4xf32>
    %187 = vector.shape_cast %186 : vector<4xf32> to vector<4x1xf32>
    %188 = vector.shape_cast %187 : vector<4x1xf32> to vector<4x1x1xf32>
    %cst_65 = arith.constant 4.8828125E-4 : f32
    %189 = vector.broadcast %cst_65 : f32 to vector<4x1x1xf32>
    %190 = arith.mulf %185, %189 : vector<4x1x1xf32>
    %cst_66 = arith.constant 4.8828125E-4 : f32
    %191 = vector.broadcast %cst_66 : f32 to vector<4x1x1xf32>
    %192 = arith.mulf %188, %191 : vector<4x1x1xf32>
    %193 = arith.mulf %190, %190 : vector<4x1x1xf32>
    %194 = arith.subf %192, %193 : vector<4x1x1xf32>
    %cst_67 = arith.constant 0.000000e+00 : f32
    %195 = vector.broadcast %cst_67 : f32 to vector<4x1x1xf32>
    %196 = arith.maximumf %194, %195 : vector<4x1x1xf32>
    %cst_68 = arith.constant 9.99999974E-6 : f32
    %197 = vector.broadcast %cst_68 : f32 to vector<4x1x1xf32>
    %198 = arith.addf %196, %197 : vector<4x1x1xf32>
    %199 = math.rsqrt %198 : vector<4x1x1xf32>
    %200 = vector.shape_cast %177 : vector<64x128xf32> to vector<4x16x128xf32>
    %201 = vector.broadcast %190 : vector<4x1x1xf32> to vector<4x16x128xf32>
    %202 = arith.subf %200, %201 : vector<4x16x128xf32>
    %203 = vector.broadcast %199 : vector<4x1x1xf32> to vector<4x16x128xf32>
    %204 = arith.mulf %202, %203 : vector<4x16x128xf32>
    %205 = vector.shape_cast %204 : vector<4x16x128xf32> to vector<64x128xf32>
    %206 = arith.truncf %205 : vector<64x128xf32> to vector<64x128xbf16>
    %c3_69 = arith.constant 3 : index
    %c0_70 = arith.constant 0 : index
    %c0_71 = arith.constant 0 : index
    %207 = vector.load %arg3[%c3_69, %c0_70, %c0_71] : memref<4x128x128xbf16, #tpu.memory_space<vmem>>, vector<1x128x128xbf16>
    %208 = vector.shape_cast %207 : vector<1x128x128xbf16> to vector<128x128xbf16>
    %cst_72 = arith.constant dense<0.000000e+00> : vector<64x128xf32>
    %209 = tpu.matmul %206, %208, %cst_72 {dimension_numbers = #tpu.dot_dimension_numbers<[1], [0], [0], [1], [0, 0, 1, 1], [], []>} : vector<64x128xbf16>, vector<128x128xbf16>, vector<64x128xf32> -> vector<64x128xf32>
    %c13 = arith.constant 13 : index
    %c0_73 = arith.constant 0 : index
    %210 = vector.load %arg4[%c13, %c0_73] : memref<16x128xf32, #tpu.memory_space<vmem>>, vector<1x128xf32>
    %211 = vector.broadcast %210 : vector<1x128xf32> to vector<64x128xf32>
    %212 = arith.addf %209, %211 : vector<64x128xf32>
    %c0_74 = arith.constant 0 : index
    %c0_75 = arith.constant 0 : index
    %213 = vector.load %arg6[%c0_74, %c0_75] : memref<64x128xf32, #tpu.memory_space<vmem>>, vector<64x128xf32>
    tpu.vector_store %arg6[%c0_74, %c0_75], %212 {strides = array<i32>} : memref<64x128xf32, #tpu.memory_space<vmem>>, vector<64x128xf32>,
    return
  }
  func.func @transform_0(%arg0: i32) -> (i32, i32) {
    %c0_i32 = arith.constant 0 : i32
    %c0_i32_0 = arith.constant 0 : i32
    return %arg0, %c0_i32 : i32, i32
  }
  func.func @transform_1(%arg0: i32) -> (i32, i32) {
    %c0_i32 = arith.constant 0 : i32
    %c0_i32_0 = arith.constant 0 : i32
    return %arg0, %c0_i32 : i32, i32
  }
  func.func @transform_2(%arg0: i32) -> (i32, i32, i32) {
    %c0_i32 = arith.constant 0 : i32
    %c0_i32_0 = arith.constant 0 : i32
    %c0_i32_1 = arith.constant 0 : i32
    %c0_i32_2 = arith.constant 0 : i32
    return %c0_i32, %c0_i32_0, %c0_i32_1 : i32, i32, i32
  }
  func.func @transform_3(%arg0: i32) -> (i32, i32) {
    %c0_i32 = arith.constant 0 : i32
    %c0_i32_0 = arith.constant 0 : i32
    %c0_i32_1 = arith.constant 0 : i32
    return %c0_i32, %c0_i32_0 : i32, i32
  }
  func.func @transform_4(%arg0: i32) -> i32 {
    %c0_i32 = arith.constant 0 : i32
    %c0_i32_0 = arith.constant 0 : i32
    return %c0_i32 : i32
  }
  func.func @transform_5(%arg0: i32) -> (i32, i32) {
    %c0_i32 = arith.constant 0 : i32
    %c0_i32_0 = arith.constant 0 : i32
    return %arg0, %c0_i32 : i32, i32
  }
}

</mosaic_0001>

<bundles_post_ra>
// kernel: tpu_custom_call.1
= control target key start
LH: loop header
LB: loop body
LE: loop exit
PB: predicated region body
PF: predicated region fallthrough
CT: control target
= control target key end

     0   :  { %10 = vsyncpa [#allocation3], 0  ;;  %s2879_s0 = inlined_call_operand.vmem [shape: bf16[128,128], index: 0, kind: input, shape index: {}]   ;;  %s2880_s1 = inlined_call_operand.vmem [shape: f32[128,3], index: 1, kind: input, shape index: {}]   ;;  %s2881_s2 = inlined_call_operand.hbm [shape: bf16[4,128,128], index: 2, kind: input, shape index: {}]   ;;  %s2882_s3 = inlined_call_operand.vmem [shape: f32[16,128], index: 3, kind: input, shape index: {}]   ;;  %s2883_s4 = inlined_call_operand.vmem [shape: f32[3], index: 4, kind: input, shape index: {}]   ;;  %s2884_s5 = inlined_call_operand.hbm [shape: f32[128,128], index: 5, kind: output, shape index: {}]  }
   0x1   :  { %11 = vsyncpa [#allocation5], 0 }
   0x2   :  { %12 = vsyncpa [#allocation4], 0 }
   0x3   :  { %14 = vsyncpa [#allocation4 + $0x1], 0  ;;  %s2250_s18 = smov 0   ;;  %s2252_s19 = smov 0  }
   0x4   :  { %s2254_s20 = smov 0   ;;  %s2256_s21 = smov 0  }
   0x5 LB: > { %s2271_s22 = sadd.s32 4294967295, %s2208_s21   ;;  %s1744_s23 = sadd.s32 4294967294, %s2208_s21   ;;  %s2208_s21 = sphi %s2256_s21, %s2891_s21   ;;  %s2204_s20 = sphi %s2254_s20, %s2890_s20   ;;  %s2200_s19 = sphi %s2252_s19, %s2889_s19   ;;  %s2196_s18 = sphi %s2250_s18, %s2888_s18  }
   0x6   : > { %s2275_s24 = sadd.s32 1, %s2208_s21   ;;  %s142_s25 = sadd.s32 1, %s2204_s20 }
   0x7   : > { %s139_s26 = ssub.s32 %s2208_s21, %s2275_s24  ;;  %p152_p0 = scmp.ne.s32.totalorder %s2204_s20, %s2200_s19 }
   0x8   : > { %p140_p1 = scmp.eq.s32.totalorder %s139_s26, 0  ;;  %p153_p2 = scmp.eq.s32.totalorder %s2271_s22, 1 }
   0x9   : > { %p158_p3 = scmp.ne.s32.totalorder %s2200_s19, %s2196_s18  ;;  %p159_p4 = scmp.eq.s32.totalorder %s1744_s23, 1 }
   0xa   : > { %s2286_s27 = scalar_select %p140_p1, %s2204_s20, %s142_s25  }
   0xb   : > { %p2288_p5 = por %p153_p2, %p152_p0  ;;  %p2292_p6 = por %p159_p4, %p158_p3 }
   0xc   : > { %p1745_p7 = scmp.ge.s32.totalorder %s2208_s21, 1  ;;  %p166_p8 = scmp.lt.s32.totalorder %s2208_s21, 3 }
   0xd   : > { %p1982_p9 = scmp.eq.s32.totalorder %s2271_s22, 0  ;;  %s177_s8 = sshll.u32 %s2881_s2, 4  ;;  %s178_s8 = int_to_ptr.hbm [resolvable:$true] %s177_s8 }
   0xe   : > { %p2299_p10 = pnand %p1745_p7, %p166_p8  ;;  %s2210_s9 = smov [#allocation2]  }
   0xf   : > { %s179_s10 = sshll.u32 %s2210_s9, 4  ;;  %s195_s13 = sshll.u32 %s2883_s4, 4  ;;  %s180_s10 = int_to_ptr.vmem [resolvable:$true] %s179_s10  ;;  %s196_s13 = int_to_ptr.vmem [resolvable:$true] %s195_s13 }
  0x10   : > { %p1971_p11 = pneg %p2299_p10  ;;  %s2211_s14 = smov 64  }
  0x11   : > { %s2212_s15 = smov 4   ;;  %s2213_s16 = smov [#allocation6]  }
  0x12   : > { %p1972_p12 = pnand %p1982_p9, %p1971_p11  ;;  %226 = sbr.rel (%p2299_p10) target bundleno = 1988 (0x7c4), region = 40 }
  0x14   : > { %1974 = dma.hbm_to_vmem [thread:$0]  (!%p1972_p12), %s178_s8, 4096, %s180_s10, [#allocation3], %s2211_s14, %s2211_s14, %s2212_s15  }
  0x15   : > { %1977 = dma.vmem_to_smem (!%p1972_p12), %s196_s13, 16, %s2213_s16, [#allocation5]  }
  0x17   : > { %2183 = dma.done.wait (%p1982_p9), [#allocation3], 4096  }
  0x18   : > { %2185 = vsyncadd (%p1982_p9), [#allocation3], 4294963200 }
  0x19   : > { %2187 = dma.done.wait (%p1982_p9), [#allocation5], 16  }
  0x1a   : > { %2189 = vsyncadd (%p1982_p9), [#allocation5], 4294967280 }
  0x1b   : > { %238 = sfence }
  0x1c   : > { %s1753_s17 = sshll.u32 %s2271_s22, 3  ;;  %v2214_v0 = vmov 1   ;;  %v2215_v1 = vmov 0   ;;  %v2216_v2 = vmov 2   ;;  %v1927_v9 = vld [vmem:[#allocation2 + $0x38] sm:$0xff]  ;;  %v1926_v10 = vld [vmem:[#allocation2 + $0x30] sm:$0xff] }
  0x1d   : > { %2030 = vset.pattern.permute.xlu1 %v2214_v0  ;;  %2029 = vset.pattern.permute.xlu0 %v2215_v1  ;;  %p267_p13 = scmp.lt.s32.totalorder %s1753_s17, 15  ;;  %v1925_v11 = vld [vmem:[#allocation2 + $0x28] sm:$0xff]  ;;  %v1924_v13 = vld [vmem:[#allocation2 + $0x20] sm:$0xff]  ;;  %v1923_v15 = vld [vmem:[#allocation2 + $0x18] sm:$0xff]  ;;  %vm593_vm3 = vcmask 523264   ;;  %vm635_vm4 = vcmask 1043456  }
  0x1e   : > { %2031 = vset.pattern.permute.xlu2 %v2216_v2  ;;  %398 = vmatpush.bf16.msra.mxu0 %v1927_v9  ;;  %v1922_v16 = vld [vmem:[#allocation2 + $0x10] sm:$0xff]  ;;  %v1921_v17 = vld [vmem:[#allocation2 + $0x8] sm:$0xff]  ;;  %v1920_v18 = vld [vmem:[#allocation2] sm:$0xff]  ;;  %s263_s7 = sand.u32 1, %s2200_s19   ;;  %s1952_s12 = sshll.u32 %s2271_s22, 6 }
  0x1f   : > { %s2893_s17 = smov (!%p267_p13, %s1753_s17), 15  ;;  %v2351_v22 = vld [vmem:[%s2882_s3 + $0x2] ss:$0 sm:$0xff]  ;;  %v2356_v23 = vld [vmem:[%s2882_s3 + $0x1] ss:$0 sm:$0xff]  ;;  %s1752_s8 = sshll.u32 %s263_s7, 6 }
  0x20   : > { %s1756_s23 = sshll.u32 %s2893_s17, 3  ;;  %s1754_s6 = sshll.u32 %s2893_s17, 2  ;;  %v2361_v27 = vld [vmem:[%s2882_s3 + $0x3] ss:$0 sm:$0xff]  ;;  %v2371_v38 = vld [vmem:[%s2882_s3 + $0x4] ss:$0 sm:$0xff] }
  0x21   : > { %s2330_s30 = scalar_lea.vmem %s2880_s1, %s1756_s23  ;;  %s2344_s9 = scalar_lea.vmem %s2879_s0, %s1754_s6 }
  0x22   : > { %v306_v3 = vld [vmem:[%s2330_s30 + $0x30] sm:$0xff]  ;;  %v307_v4 = vld [vmem:[%s2330_s30 + $0x38] sm:$0xff]  ;;  %v304_v5 = vld [vmem:[%s2330_s30 + $0x20] sm:$0xff]  ;;  %399 = vmatpush.bf16.msra.mxu0 %v1926_v10  ;;  %s2490_s23 = sld [smem:[#allocation6]]  ;;  %s265_s11 = scalar_lea.vmem [#allocation7], %s1752_s8 }
  0x23   : > { %503 = vperm.xlu1 %2030, %v306_v3   ;;  %460 = vperm.xlu0 %2029, %v306_v3   ;;  %v305_v6 = vld [vmem:[%s2330_s30 + $0x28] sm:$0xff]  ;;  %v302_v7 = vld [vmem:[%s2330_s30 + $0x10] sm:$0xff]  ;;  %v303_v8 = vld [vmem:[%s2330_s30 + $0x18] sm:$0xff]  ;;  %s1642_s15 = scalar_lea.hbm %s2884_s5, %s1952_s12  ;;  %s1643_s16 = sshll.u32 %s265_s11, 4  ;;  %s1644_s16 = int_to_ptr.vmem [resolvable:$true] %s1643_s16 }
  0x24   : > { %553 = vperm.xlu2 %2031, %v306_v3   ;;  %v300_v12 = vld [vmem:[%s2330_s30] sm:$0xff]  ;;  %v301_v14 = vld [vmem:[%s2330_s30 + $0x8] sm:$0xff]  ;;  %v1918_v41 = vld [vmem:[%s2344_s9 + $0x10] sm:$0xff]  ;;  %s1645_s17 = sshll.u32 %s1642_s15, 4  ;;  %s2158_s6 = scalar_lea.hbm %s2884_s5, 128  ;;  %s1646_s17 = int_to_ptr.hbm [resolvable:$true] %s1645_s17 }
  0x25   : > { %v1916_v19 = vld [vmem:[%s2344_s9] sm:$0xff]  ;;  %v1917_v21 = vld [vmem:[%s2344_s9 + $0x8] sm:$0xff]  ;;  %v1919_v55 = vld [vmem:[%s2344_s9 + $0x18] sm:$0xff]  ;;  %s1841_s9 = sld [smem:[#allocation6 + $0x1]]  ;;  %s2152_s25 = sshra.s32 %s1646_s17, 4  ;;  %s2153_s25 = int_to_ptr.hbm [resolvable:$true] %s2152_s25 }
  0x26   : > { %400 = vmatpush.bf16.msra.mxu0 %v1925_v11  ;;  %s2154_s26 = scalar_lea.hbm %s2153_s25, 64  ;;  %p2159_p3 = scmp.lt.s32.totalorder %s2153_s25, %s2884_s5 }
  0x27   : > { %p2155_p0 = scmp.ne.s32.totalorder %s2153_s25, %s2154_s26  ;;  %p2160_p4 = scmp.lt.s32.totalorder %s2158_s6, %s2154_s26 }
  0x29   : > { %p2156_p1 = pnand %p2155_p0, %p2288_p5  ;;  %p2161_p7 = por %p2160_p4, %p2159_p3 }
  0x2a   : > { %401 = vmatpush.bf16.msra.mxu0 %v1924_v13 }
  0x2b   : > { %507 = vperm.xlu1 %2030, %v307_v4   ;;  %465 = vperm.xlu0 %2029, %v307_v4   ;;  %p2157_p2 = pneg %p2156_p1 }
  0x2c   : > { %557 = vperm.xlu2 %2031, %v307_v4  }
  0x2d   : > { %p2162_p8 = pnand %p2161_p7, %p2157_p2 }
  0x2e   : > { %402 = vmatpush.bf16.msra.mxu0 %v1923_v15 }
  0x32   : > { %403 = vmatpush.bf16.msra.mxu0 %v1922_v16 }
  0x33   : > { %2032 = vset.pattern.permute.xlu1 %v2215_v1  ;;  %450 = vperm.xlu0 %2029, %v304_v5  }
  0x34   : > { %455 = vperm.xlu1 %2032, %v305_v6   ;;  %2033 = vset.pattern.permute.xlu2 %v2214_v0 }
  0x35   : > { %495 = vperm.xlu2 %2033, %v304_v5  }
  0x36   : > { %404 = vmatpush.bf16.msra.mxu0 %v1921_v17 }
  0x3a   : > { %405 = vmatpush.bf16.msra.mxu0 %v1920_v18 }
  0x3b   : > { %2034 = vset.pattern.permute.xlu0 %v2214_v0 }
  0x3c   : > { %2035 = vset.pattern.permute.xlu1 %v2216_v2  ;;  %499 = vperm.xlu0 %2034, %v305_v6  }
  0x3d   : > { %545 = vperm.xlu1 %2035, %v304_v5   ;;  %2036 = vset.pattern.permute.xlu2 %v2216_v2 }
  0x3e   : > { %549 = vperm.xlu2 %2036, %v305_v6   ;;  %406 = vmatmul.bf16.vlgmr.msra.gmra.mxu0 %v1916_v19 }
  0x44   : > { %487 = vperm.xlu0 %2034, %v302_v7  }
  0x45   : > { %2037 = vset.pattern.permute.xlu1 %v2215_v1 }
  0x46   : > { %440 = vperm.xlu1 %2037, %v302_v7   ;;  %2038 = vset.pattern.permute.xlu2 %v2215_v1 }
  0x47   : > { %445 = vperm.xlu2 %2038, %v303_v8  }
  0x4c   : > { %2041 = vset.pattern.permute.xlu0 %v2216_v2 }
  0x4d   : > { %541 = vperm.xlu0 %2041, %v303_v8  }
  0x4e   : > { %2039 = vset.pattern.permute.xlu1 %v2214_v0  ;;  %411 = vmatmul.bf16.gmra.mxu0 %v1917_v21 }
  0x4f   : > { %491 = vperm.xlu1 %2039, %v303_v8   ;;  %2040 = vset.pattern.permute.xlu2 %v2216_v2 }
  0x50   : > { %537 = vperm.xlu2 %2040, %v302_v7  }
  0x55   : > { %529 = vperm.xlu0 %2041, %v300_v12  }
  0x57   : > { %2042 = vset.pattern.permute.xlu1 %v2215_v1 }
  0x58   : > { %430 = vperm.xlu1 %2042, %v300_v12   ;;  %2043 = vset.pattern.permute.xlu2 %v2215_v1 }
  0x59   : > { %435 = vperm.xlu2 %2043, %v301_v14  }
  0x5e   : > { %416 = vmatmul.bf16.gmra.mxu0 %v1918_v41 }
  0x60   : > { %2044 = vset.pattern.permute.xlu1 %v2214_v0 }
  0x61   : > { %479 = vperm.xlu1 %2044, %v300_v12   ;;  %2045 = vset.pattern.permute.xlu2 %v2214_v0 }
  0x62   : > { %483 = vperm.xlu2 %2045, %v301_v14  }
  0x69   : > { %2046 = vset.pattern.permute.xlu1 %v2216_v2 }
  0x6a   : > { %533 = vperm.xlu1 %2046, %v301_v14  }
  0x6e   : > { %421 = vmatmul.bf16.gmra.mxu0 %v1919_v55 }
  0x7e   : > { %v554_v20 = vpop.permute.xlu2 %553 }
  0x7f   : > { %v567_v30 = vmul.f32 %v2361_v27, %v554_v20 }
  0x86   : > { %v558_v24 = vpop.permute.xlu2 %557 }
  0x87   : > { %v568_v39 = vmul.f32 %v2361_v27, %v558_v24 }
  0x8f   : > { %v496_v32 = vpop.permute.xlu2 %495 }
  0x90   : > { %v515_v52 = vmul.f32 %v2351_v22, %v496_v32  ;;  %v280_v32 = vlaneseq }
  0x95   : > { %v504_v25 = vpop.permute.xlu1 %503  ;;  %v461_v26 = vpop.permute.xlu0 %460 }
  0x96   : > { %v517_v28 = vmul.f32 %v2351_v22, %v504_v25  ;;  %v475_v29 = vmul.f32 %v2356_v23, %v461_v26 }
  0x98   : > { %v525_v31 = vadd.f32 %v517_v28, %v475_v29  ;;  %v550_v50 = vpop.permute.xlu2 %549 }
  0x99   : > { %v566_v57 = vmul.f32 %v2361_v27, %v550_v50 }
  0x9a   : > { %v575_v35 = vadd.f32 %v567_v30, %v525_v31 }
  0x9c   : > { %v2376_v43 = vadd.f32 %v2371_v38, %v575_v35  ;;  %v283_v35 = vshrl.u32 %v280_v32, 7 }
  0x9d   : > { %v508_v33 = vpop.permute.xlu1 %507  ;;  %v466_v34 = vpop.permute.xlu0 %465 }
  0x9e   : > { %v518_v36 = vmul.f32 %v2351_v22, %v508_v33  ;;  %v476_v37 = vmul.f32 %v2356_v23, %v466_v34  ;;  %v616_v48 = vmul.f32 %v2376_v43, %v2376_v43 }
  0xa0   : > { %v526_v40 = vadd.f32 %v518_v36, %v476_v37  ;;  %v286_v37 = vadd.s32 1, %v283_v35 }
  0xa1   : > { %v446_v63 = vpop.permute.xlu2 %445 }
  0xa2   : > { %v576_v42 = vadd.f32 %v568_v39, %v526_v40  ;;  %v472_v17 = vmul.f32 %v2356_v23, %v446_v63 }
  0xa4   : > { %v2379_v44 = vadd.f32 %v2371_v38, %v576_v42 }
  0xa5   : > { %v451_v45 = vpop.permute.xlu0 %450 }
  0xa6   : > { %v456_v46 = vpop.permute.xlu1 %455  ;;  %v592_v47 = vpack.c.bf16 %v2379_v44, %v2376_v43  ;;  %v617_v49 = vmul.f32 %v2379_v44, %v2379_v44  ;;  %v473_v53 = vmul.f32 %v2356_v23, %v451_v45  ;;  %v281_v45 = vand.u32 127, %v280_v32 }
  0xa7   : > { %v474_v56 = vmul.f32 %v2356_v23, %v456_v46 }
  0xa8   : > { %601 = vmatpush.bf16.msra.mxu1 %v592_v47  ;;  %v621_v51 = vpack.c.bf16 %v617_v49, %v616_v48  ;;  %v523_v60 = vadd.f32 %v515_v52, %v473_v53  ;;  %v284_v48 = vmul.u32 16, %v283_v35  ;;  %v287_v49 = vmul.u32 16, %v286_v37 }
  0xaa   : > { %626 = vmatpush.bf16.msrb.mxu0 %v621_v51  ;;  %v538_v12 = vpop.permute.xlu2 %537  ;;  %vm285_vm0 = vcmp.ge.s32.totalorder %v281_v45, %v284_v48  ;;  %vm288_vm1 = vcmp.lt.s32.totalorder %v281_v45, %v287_v49 }
  0xab   : > { %v563_v14 = vmul.f32 %v2361_v27, %v538_v12  ;;  %vm289_vm2 = vmand %vm285_vm0, %vm288_vm1 }
  0xae   : > { %v500_v54 = vpop.permute.xlu0 %499 }
  0xaf   : > { %v516_v58 = vmul.f32 %v2351_v22, %v500_v54  ;;  %v546_v59 = vpop.permute.xlu1 %545 }
  0xb0   : > { %v565_v61 = vmul.f32 %v2361_v27, %v546_v59  ;;  %v2217_v59 = vmov 0.0  }
  0xb1   : > { %v524_v62 = vadd.f32 %v516_v58, %v474_v56 }
  0xb2   : > { %v573_v0 = vadd.f32 %v565_v61, %v523_v60  ;;  %v290_v60 = vsel %vm289_vm2, 1.0, %v2217_v59 }
  0xb3   : > { %v574_v1 = vadd.f32 %v566_v57, %v524_v62  ;;  %v436_v33 = vpop.permute.xlu2 %435 }
  0xb4   : > { %v2395_v2 = vadd.f32 %v2371_v38, %v573_v0  ;;  %v470_v50 = vmul.f32 %v2356_v23, %v436_v33 }
  0xb5   : > { %v2398_v3 = vadd.f32 %v2371_v38, %v574_v1 }
  0xb6   : > { %v614_v4 = vmul.f32 %v2395_v2, %v2395_v2  ;;  %v488_v5 = vpop.permute.xlu0 %487 }
  0xb7   : > { %v591_v6 = vpack.c.bf16 %v2398_v3, %v2395_v2  ;;  %v615_v7 = vmul.f32 %v2398_v3, %v2398_v3  ;;  %v513_v10 = vmul.f32 %v2351_v22, %v488_v5 }
  0xb8   : > { %v441_v8 = vpop.permute.xlu1 %440 }
  0xb9   : > { %602 = vmatpush.bf16.msra.mxu1 %v591_v6  ;;  %v620_v9 = vpack.c.bf16 %v615_v7, %v614_v4  ;;  %v471_v11 = vmul.f32 %v2356_v23, %v441_v8 }
  0xbb   : > { %627 = vmatpush.bf16.msrb.mxu0 %v620_v9  ;;  %v521_v13 = vadd.f32 %v513_v10, %v471_v11 }
  0xbc   : > { %v484_v42 = vpop.permute.xlu2 %483 }
  0xbd   : > { %v571_v18 = vadd.f32 %v563_v14, %v521_v13  ;;  %v512_v51 = vmul.f32 %v2351_v22, %v484_v42  ;;  %v1935_v14 = vld [vmem:[#allocation2 + $0x78] sm:$0xff] }
  0xbe   : > { %855 = vmatpush.bf16.msra.mxu2 %v1935_v14  ;;  %1953 = vmatpush.bf16.msra.mxu3 %v1935_v14 }
  0xbf   : > { %v542_v15 = vpop.permute.xlu0 %541  ;;  %v2413_v24 = vadd.f32 %v2371_v38, %v571_v18  ;;  %v520_v54 = vadd.f32 %v512_v51, %v470_v50  ;;  %v1931_v18 = vld [vmem:[#allocation2 + $0x58] sm:$0xff]  ;;  %v1928_v51 = vld [vmem:[#allocation2 + $0x40] sm:$0xff] }
  0xc0   : > { %v564_v20 = vmul.f32 %v2361_v27, %v542_v15  ;;  %v1934_v15 = vld [vmem:[#allocation2 + $0x70] sm:$0xff] }
  0xc1   : > { %v492_v16 = vpop.permute.xlu1 %491  ;;  %v612_v30 = vmul.f32 %v2413_v24, %v2413_v24 }
  0xc2   : > { %v514_v19 = vmul.f32 %v2351_v22, %v492_v16  ;;  %856 = vmatpush.bf16.msra.mxu2 %v1934_v15  ;;  %1954 = vmatpush.bf16.msra.mxu3 %v1934_v15  ;;  %v1933_v16 = vld [vmem:[#allocation2 + $0x68] sm:$0xff] }
  0xc4   : > { %v522_v21 = vadd.f32 %v514_v19, %v472_v17  ;;  %v1932_v17 = vld [vmem:[#allocation2 + $0x60] sm:$0xff] }
  0xc6   : > { %v572_v25 = vadd.f32 %v564_v20, %v522_v21  ;;  %857 = vmatpush.bf16.msra.mxu2 %v1933_v16  ;;  %1955 = vmatpush.bf16.msra.mxu3 %v1933_v16 }
  0xc7   : > { %v530_v39 = vpop.permute.xlu0 %529 }
  0xc8   : > { %v2416_v26 = vadd.f32 %v2371_v38, %v572_v25  ;;  %v561_v46 = vmul.f32 %v2361_v27, %v530_v39 }
  0xca   : > { %v431_v28 = vpop.permute.xlu1 %430  ;;  %v590_v29 = vpack.c.bf16 %v2416_v26, %v2413_v24  ;;  %v613_v31 = vmul.f32 %v2416_v26, %v2416_v26  ;;  %858 = vmatpush.bf16.msra.mxu2 %v1932_v17  ;;  %1956 = vmatpush.bf16.msra.mxu3 %v1932_v17 }
  0xcb   : > { %v469_v41 = vmul.f32 %v2356_v23, %v431_v28 }
  0xcc   : > { %603 = vmatpush.bf16.msra.mxu1 %v590_v29  ;;  %v619_v34 = vpack.c.bf16 %v613_v31, %v612_v30  ;;  %v1930_v29 = vld [vmem:[#allocation2 + $0x50] sm:$0xff] }
  0xce   : > { %628 = vmatpush.bf16.msrb.mxu0 %v619_v34  ;;  %859 = vmatpush.bf16.msra.mxu2 %v1931_v18 }
  0xcf   : > { %1957 = vmatpush.bf16.msra.mxu3 %v1931_v18 }
  0xd2   : > { %860 = vmatpush.bf16.msra.mxu2 %v1930_v29 }
  0xd3   : > { %v480_v36 = vpop.permute.xlu1 %479  ;;  %1958 = vmatpush.bf16.msra.mxu3 %v1930_v29 }
  0xd4   : > { %v511_v40 = vmul.f32 %v2351_v22, %v480_v36 }
  0xd6   : > { %v519_v47 = vadd.f32 %v511_v40, %v469_v41  ;;  %v1929_v40 = vld [vmem:[#allocation2 + $0x48] sm:$0xff] }
  0xd7   : > { %861 = vmatpush.bf16.msra.mxu2 %v1929_v40  ;;  %1959 = vmatpush.bf16.msra.mxu3 %v1929_v40 }
  0xd8   : > { %v569_v52 = vadd.f32 %v561_v46, %v519_v47 }
  0xda   : > { %v2431_v57 = vadd.f32 %v2371_v38, %v569_v52 }
  0xdb   : > { %862 = vmatpush.bf16.msra.mxu2 %v1928_v51  ;;  %1960 = vmatpush.bf16.msra.mxu3 %v1928_v51 }
  0xdc   : > { %v534_v53 = vpop.permute.xlu1 %533  ;;  %v610_v23 = vmul.f32 %v2431_v57, %v2431_v57 }
  0xdd   : > { %v562_v55 = vmul.f32 %v2361_v27, %v534_v53  ;;  %v2442_v27 = vpack.c.bf16 %v290_v60, %v290_v60 }
  0xdf   : > { %v570_v56 = vadd.f32 %v562_v55, %v520_v54 }
  0xe1   : > { %v2434_v58 = vadd.f32 %v2371_v38, %v570_v56  ;;  %v2448_v38 = vpop.f32.mrf.mxu0 }
  0xe3   : > { %v589_v22 = vpack.c.bf16 %v2434_v58, %v2431_v57  ;;  %v611_v61 = vmul.f32 %v2434_v58, %v2434_v58 }
  0xe5   : > { %604 = vmatpush.bf16.msra.mxu1 %v589_v22  ;;  %v618_v62 = vpack.c.bf16 %v611_v61, %v610_v23 }
  0xe7   : > { %629 = vmatpush.bf16.msrb.mxu0 %v618_v62 }
  0xe8   : > { %1805 = vmatmul.msk.bf16.vlgmr.msra.gmra.mxu1 %vm593_vm3, %v2442_v27 }
  0xe9   : > { %v2450_v63 = vpop.f32.mrf.mxu0 }
  0xea   : > { %1806 = vmatmul.msk.bf16.vlgmr.msrb.gmra.mxu0 %vm593_vm3, %v2442_v27 }
  0xf1   : > { %v2452_v0 = vpop.f32.mrf.mxu0 }
  0xf9   : > { %v2454_v1 = vpop.f32.mrf.mxu0 }
 0x101   : > { %v2456_v4 = vpop.f32.mrf.mxu0 }
 0x109   : > { %v2458_v5 = vpop.f32.mrf.mxu0 }
 0x111   : > { %v2460_v6 = vpop.f32.mrf.mxu0 }
 0x119   : > { %v2462_v7 = vpop.f32.mrf.mxu0 }
 0x165   : > { %v606_v8 = vpop.f32.mrf.mxu1 }
 0x166   : > { %v636_v9 = vsel %vm635_vm4, %v606_v8, 0.0 }
 0x167   : > { %637 = vadd.xlane.f32.xlu2 %v636_v9  ;;  %v631_v10 = vpop.f32.mrf.mxu0 }
 0x168   : > { %v648_v11 = vsel %vm635_vm4, %v631_v10, 0.0 }
 0x169   : > { %649 = vadd.xlane.f32.xlu0 %v648_v11 }
 0x16d   : > { %v608_v12 = vpop.f32.mrf.mxu1 }
 0x16f   : > { %v633_v13 = vpop.f32.mrf.mxu0 }
 0x1da   : > { %v638_v19 = vpop.xlane.xlu2 %637 }
 0x1db   : > { %v640_v20 = vperm.slane %v638_v19, 0  ;;  %v641_v21 = vperm.slane %v638_v19, 1  ;;  %v642_v25 = vperm.slane %v638_v19, 2  ;;  %v643_v28 = vperm.slane %v638_v19, 3 }
 0x1dc   : > { %v650_v30 = vpop.xlane.xlu0 %649 }
 0x1dd   : > { %v2466_v31 = vmul.f32 0.001953125, %v640_v20  ;;  %v2468_v32 = vmul.f32 0.001953125, %v641_v21  ;;  %v2470_v33 = vmul.f32 0.001953125, %v642_v25  ;;  %v2472_v34 = vmul.f32 0.001953125, %v643_v28 }
 0x1de   : > { %v652_v35 = vperm.slane %v650_v30, 0  ;;  %v653_v36 = vperm.slane %v650_v30, 1  ;;  %v654_v37 = vperm.slane %v650_v30, 2  ;;  %v655_v39 = vperm.slane %v650_v30, 3 }
 0x1df   : > { %v668_v41 = vmul.f32 %v2466_v31, %v2466_v31  ;;  %v669_v42 = vmul.f32 %v2468_v32, %v2468_v32  ;;  %v670_v45 = vmul.f32 %v2470_v33, %v2470_v33  ;;  %v671_v46 = vmul.f32 %v2472_v34, %v2472_v34 }
 0x1e0   : > { %v664_v47 = vmul.f32 0.001953125, %v652_v35  ;;  %v665_v48 = vmul.f32 0.001953125, %v653_v36  ;;  %v666_v49 = vmul.f32 0.001953125, %v654_v37  ;;  %v667_v50 = vmul.f32 0.001953125, %v655_v39 }
 0x1e1   : > { %v724_v30 = vsub.f32 %v2431_v57, %v2466_v31  ;;  %v725_v40 = vsub.f32 %v2434_v58, %v2466_v31  ;;  %v729_v58 = vsub.f32 %v2398_v3, %v2470_v33  ;;  %v727_v51 = vsub.f32 %v2416_v26, %v2468_v32 }
 0x1e2   : > { %v672_v52 = vsub.f32 %v664_v47, %v668_v41  ;;  %v673_v53 = vsub.f32 %v665_v48, %v669_v42  ;;  %v674_v54 = vsub.f32 %v666_v49, %v670_v45  ;;  %v675_v55 = vsub.f32 %v667_v50, %v671_v46  ;;  %v2052_v42 = vld [vmem:[%s2882_s3 + $0x5] ss:$0 sm:$0xff] }
 0x1e3   : > { %v728_v41 = vsub.f32 %v2395_v2, %v2470_v33  ;;  %v2053_v2 = vld [vmem:[%s2882_s3 + $0x6] ss:$0 sm:$0xff]  ;;  %v726_v50 = vsub.f32 %v2413_v24, %v2468_v32  ;;  %v767_v33 = vstv %s2490_s23  ;;  %s2743_s23 = sld [smem:[#allocation6 + $0x2]] }
 0x1e4   : > { %v676_v56 = vmax.f32 %v672_v52, 0.0  ;;  %v677_v59 = vmax.f32 %v673_v53, 0.0  ;;  %v678_v60 = vmax.f32 %v674_v54, 0.0  ;;  %v679_v22 = vmax.f32 %v675_v55, 0.0 }
 0x1e6   : > { %v680_v23 = vadd.f32 1e-05, %v676_v56  ;;  %v681_v61 = vadd.f32 1e-05, %v677_v59  ;;  %v682_v62 = vadd.f32 1e-05, %v678_v60 }
 0x1e7   : > { %v2482_v8 = vadd.f32 1e-05, %v679_v22 }
 0x1e8   : > { %2061 = vrsqrt.f32 %v680_v23  ;;  %vm690_vm7 = vweird.f32 %v680_v23  ;;  %vm700_vm9 = vweird.f32 %v681_v61  ;;  %vm710_vm11 = vweird.f32 %v682_v62 }
 0x1e9   : > { %2063 = vrsqrt.f32 %v681_v61  ;;  %vm720_vm15 = vweird.f32 %v2482_v8 }
 0x1ea   : > { %2065 = vrsqrt.f32 %v682_v62 }
 0x1eb   : > { %2067 = vrsqrt.f32 %v2482_v8 }
 0x1ee   : > { %v2062_v9 = vpop.eup %2061 }
 0x1ef   : > { %v2064_v10 = vpop.eup %2063  ;;  %v685_v11 = vmul.f32 %v2062_v9, %v680_v23  ;;  %vm691_vm5 = vweird.f32 %v2062_v9 }
 0x1f0   : > { %v2066_v12 = vpop.eup %2065  ;;  %v695_v13 = vmul.f32 %v2064_v10, %v681_v61  ;;  %vm701_vm6 = vweird.f32 %v2064_v10  ;;  %vm692_vm10 = vmor %vm690_vm7, %vm691_vm5 }
 0x1f1   : > { %v2485_v14 = vpop.eup %2067  ;;  %v686_v15 = vmul.f32 %v2062_v9, %v685_v11  ;;  %v705_v16 = vmul.f32 %v2066_v12, %v682_v62  ;;  %vm711_vm8 = vweird.f32 %v2066_v12  ;;  %vm702_vm12 = vmor %vm700_vm9, %vm701_vm6  ;;  %v730_v62 = vsub.f32 %v2376_v43, %v2472_v34 }
 0x1f2   : > { %v696_v17 = vmul.f32 %v2064_v10, %v695_v13  ;;  %v715_v18 = vmul.f32 %v2485_v14, %v2482_v8  ;;  %vm712_vm13 = vmor %vm710_vm11, %vm711_vm8  ;;  %vm721_vm14 = vweird.f32 %v2485_v14 }
 0x1f3   : > { %v687_v19 = vmul.f32 0.5, %v686_v15  ;;  %v706_v20 = vmul.f32 %v2066_v12, %v705_v16  ;;  %vm722_vm2 = vmor %vm720_vm15, %vm721_vm14 }
 0x1f4   : > { %v697_v21 = vmul.f32 0.5, %v696_v17  ;;  %v716_v25 = vmul.f32 %v2485_v14, %v715_v18 }
 0x1f5   : > { %v688_v28 = vsub.f32 1.5, %v687_v19  ;;  %v707_v29 = vmul.f32 0.5, %v706_v20 }
 0x1f6   : > { %v698_v35 = vsub.f32 1.5, %v697_v21  ;;  %v717_v36 = vmul.f32 0.5, %v716_v25 }
 0x1f7   : > { %v708_v37 = vsub.f32 1.5, %v707_v29  ;;  %v689_v39 = vmul.f32 %v2062_v9, %v688_v28 }
 0x1f8   : > { %v699_v57 = vmul.f32 %v2064_v10, %v698_v35  ;;  %v718_v45 = vsub.f32 1.5, %v717_v36 }
 0x1f9   : > { %v693_v46 = vsel %vm692_vm10, %v2062_v9, %v689_v39  ;;  %v709_v47 = vmul.f32 %v2066_v12, %v708_v37 }
 0x1fa   : > { %v732_v31 = vmul.f32 %v724_v30, %v693_v46  ;;  %v733_v48 = vmul.f32 %v725_v40, %v693_v46  ;;  %v703_v49 = vsel %vm702_vm12, %v2064_v10, %v699_v57  ;;  %v719_v59 = vmul.f32 %v2485_v14, %v718_v45 }
 0x1fb   : > { %v713_v52 = vsel %vm712_vm13, %v2066_v12, %v709_v47  ;;  %v734_v56 = vmul.f32 %v726_v50, %v703_v49  ;;  %v735_v24 = vmul.f32 %v727_v51, %v703_v49  ;;  %v731_v12 = vsub.f32 %v2379_v44, %v2472_v34  ;;  %v2054_v51 = vld [vmem:[%s2882_s3 + $0x7] ss:$0 sm:$0xff] }
 0x1fc   : > { %v741_v53 = vmul.f32 %v2052_v42, %v732_v31  ;;  %v742_v54 = vmul.f32 %v2052_v42, %v733_v48  ;;  %v736_v55 = vmul.f32 %v728_v41, %v713_v52  ;;  %v737_v3 = vmul.f32 %v729_v58, %v713_v52 }
 0x1fd   : > { %v723_v11 = vsel %vm722_vm2, %v2485_v14, %v719_v59  ;;  %v743_v16 = vmul.f32 %v2052_v42, %v734_v56  ;;  %v744_v19 = vmul.f32 %v2052_v42, %v735_v24 }
 0x1fe   : > { %v750_v60 = vadd.f32 %v2053_v2, %v741_v53  ;;  %v751_v22 = vadd.f32 %v2053_v2, %v742_v54  ;;  %v745_v23 = vmul.f32 %v2052_v42, %v736_v55  ;;  %v746_v61 = vmul.f32 %v2052_v42, %v737_v3 }
 0x1ff   : > { %v738_v20 = vmul.f32 %v730_v62, %v723_v11  ;;  %v739_v21 = vmul.f32 %v731_v12, %v723_v11  ;;  %v752_v29 = vadd.f32 %v2053_v2, %v743_v16  ;;  %v753_v14 = vadd.f32 %v2053_v2, %v744_v19 }
 0x200   : > { %vm759_vm0 = vcmp.gt.f32.partialorder %v750_v60, 0.0  ;;  %vm760_vm1 = vcmp.gt.f32.partialorder %v751_v22, 0.0  ;;  %v768_v26 = vmul.f32 %v767_v33, %v750_v60  ;;  %v769_v32 = vmul.f32 %v767_v33, %v751_v22 }
 0x201   : > { %v754_v9 = vadd.f32 %v2053_v2, %v745_v23  ;;  %v755_v10 = vadd.f32 %v2053_v2, %v746_v61  ;;  %v747_v30 = vmul.f32 %v2052_v42, %v738_v20  ;;  %v748_v35 = vmul.f32 %v2052_v42, %v739_v21 }
 0x202   : > { %v776_v13 = vsel %vm759_vm0, %v750_v60, %v768_v26  ;;  %v777_v15 = vsel %vm760_vm1, %v751_v22, %v769_v32  ;;  %v770_v44 = vmul.f32 %v767_v33, %v752_v29  ;;  %v771_v34 = vmul.f32 %v767_v33, %v753_v14 }
 0x203   : > { %v784_v8 = vpack.c.bf16 %v777_v15, %v776_v13  ;;  %vm763_vm5 = vcmp.gt.f32.partialorder %v754_v9, 0.0  ;;  %vm764_vm6 = vcmp.gt.f32.partialorder %v755_v10, 0.0  ;;  %v772_v17 = vmul.f32 %v767_v33, %v754_v9 }
 0x204   : > { %v773_v18 = vmul.f32 %v767_v33, %v755_v10  ;;  %v756_v36 = vadd.f32 %v2053_v2, %v747_v30  ;;  %v757_v37 = vadd.f32 %v2053_v2, %v748_v35  ;;  %vm761_vm7 = vcmp.gt.f32.partialorder %v752_v29, 0.0  ;;  %v1941_v30 = vld [vmem:[#allocation2 + $0xa8] sm:$0xff] }
 0x205   : > { %863 = vmatmul.bf16.vlgmr.msra.gmra.mxu2 %v784_v8  ;;  %v780_v43 = vsel %vm763_vm5, %v754_v9, %v772_v17  ;;  %vm762_vm8 = vcmp.gt.f32.partialorder %v753_v14, 0.0  ;;  %v778_v39 = vsel %vm761_vm7, %v752_v29, %v770_v44  ;;  %v1943_v29 = vld [vmem:[#allocation2 + $0xb8] sm:$0xff]  ;;  %v1940_v44 = vld [vmem:[#allocation2 + $0xa0] sm:$0xff] }
 0x206   : > { %v781_v25 = vsel %vm764_vm6, %v755_v10, %v773_v18  ;;  %v779_v40 = vsel %vm762_vm8, %v753_v14, %v771_v34  ;;  %v774_v41 = vmul.f32 %v767_v33, %v756_v36  ;;  %v775_v57 = vmul.f32 %v767_v33, %v757_v37  ;;  %v1942_v14 = vld [vmem:[#allocation2 + $0xb0] sm:$0xff] }
 0x207   : > { %v786_v28 = vpack.c.bf16 %v781_v25, %v780_v43  ;;  %vm765_vm9 = vcmp.gt.f32.partialorder %v756_v36, 0.0  ;;  %vm766_vm10 = vcmp.gt.f32.partialorder %v757_v37, 0.0  ;;  %v785_v45 = vpack.c.bf16 %v779_v40, %v778_v39  ;;  %v1939_v39 = vld [vmem:[#allocation2 + $0x98] sm:$0xff] }
 0x208   : > { %v782_v46 = vsel %vm765_vm9, %v756_v36, %v774_v41  ;;  %v783_v47 = vsel %vm766_vm10, %v757_v37, %v775_v57  ;;  %v1938_v41 = vld [vmem:[#allocation2 + $0x90] sm:$0xff] }
 0x209   : > { %873 = vmatmul.bf16.vlgmr.msra.gmra.mxu3 %v786_v28  ;;  %v787_v58 = vpack.c.bf16 %v783_v47, %v782_v46 }
 0x215   : > { %868 = vmatmul.bf16.gmra.mxu2 %v785_v45 }
 0x219   : > { %878 = vmatmul.bf16.gmra.mxu3 %v787_v58 }
 0x288   : > { %v864_v42 = vpop.f32.mrf.mxu2 }
 0x289   : > { %v2552_v11 = vadd.f32 %v2054_v51, %v864_v42 }
 0x28b   : > { %v903_v17 = vmul.f32 %v2552_v11, %v2552_v11 }
 0x28c   : > { %v874_v31 = vpop.f32.mrf.mxu3 }
 0x28d   : > { %v2530_v33 = vadd.f32 %v2054_v51, %v874_v31 }
 0x28f   : > { %v907_v32 = vmul.f32 %v2530_v33, %v2530_v33 }
 0x290   : > { %v866_v48 = vpop.f32.mrf.mxu2 }
 0x291   : > { %v2548_v62 = vadd.f32 %v2054_v51, %v866_v48 }
 0x293   : > { %v904_v16 = vmul.f32 %v2548_v62, %v2548_v62  ;;  %v886_v8 = vpack.c.bf16 %v2548_v62, %v2552_v11 }
 0x294   : > { %v876_v49 = vpop.f32.mrf.mxu3 }
 0x295   : > { %v2526_v54 = vadd.f32 %v2054_v51, %v876_v49  ;;  %v911_v18 = vpack.c.bf16 %v904_v16, %v903_v17  ;;  %v1937_v49 = vld [vmem:[#allocation2 + $0x88] sm:$0xff] }
 0x297   : > { %v908_v61 = vmul.f32 %v2526_v54, %v2526_v54  ;;  %v888_v26 = vpack.c.bf16 %v2526_v54, %v2530_v33 }
 0x298   : > { %v869_v50 = vpop.f32.mrf.mxu2 }
 0x299   : > { %v2542_v24 = vadd.f32 %v2054_v51, %v869_v50  ;;  %v913_v9 = vpack.c.bf16 %v908_v61, %v907_v32 }
 0x29b   : > { %v905_v13 = vmul.f32 %v2542_v24, %v2542_v24 }
 0x29c   : > { %v879_v2 = vpop.f32.mrf.mxu3 }
 0x29d   : > { %v2524_v52 = vadd.f32 %v2054_v51, %v879_v2 }
 0x29f   : > { %v909_v59 = vmul.f32 %v2524_v52, %v2524_v52 }
 0x2a0   : > { %v871_v3 = vpop.f32.mrf.mxu2 }
 0x2a1   : > { %v2538_v22 = vadd.f32 %v2054_v51, %v871_v3 }
 0x2a3   : > { %v906_v10 = vmul.f32 %v2538_v22, %v2538_v22  ;;  %v887_v12 = vpack.c.bf16 %v2538_v22, %v2542_v24 }
 0x2a4   : > { %v881_v53 = vpop.f32.mrf.mxu3 }
 0x2a5   : > { %v2528_v55 = vadd.f32 %v2054_v51, %v881_v53  ;;  %v912_v15 = vpack.c.bf16 %v906_v10, %v905_v13 }
 0x2a7   : > { %v889_v56 = vpack.c.bf16 %v2528_v55, %v2524_v52  ;;  %v910_v60 = vmul.f32 %v2528_v55, %v2528_v55 }
 0x2a9   : > { %894 = vmatpush.bf16.msrb.mxu1 %v889_v56  ;;  %v914_v23 = vpack.c.bf16 %v910_v60, %v909_v59  ;;  %v1936_v59 = vld [vmem:[#allocation2 + $0x80] sm:$0xff] }
 0x2ab   : > { %919 = vmatpush.bf16.msrb.mxu2 %v914_v23 }
 0x2ad   : > { %895 = vmatpush.bf16.msrb.mxu1 %v888_v26 }
 0x2af   : > { %920 = vmatpush.bf16.msrb.mxu2 %v913_v9 }
 0x2b1   : > { %896 = vmatpush.bf16.msrb.mxu1 %v887_v12 }
 0x2b3   : > { %921 = vmatpush.bf16.msrb.mxu2 %v912_v15 }
 0x2b5   : > { %897 = vmatpush.bf16.msrb.mxu1 %v886_v8 }
 0x2b7   : > { %922 = vmatpush.bf16.msrb.mxu2 %v911_v18 }
 0x2b8   : > { %1839 = vmatmul.msk.bf16.vlgmr.msrb.gmra.mxu1 %vm593_vm3, %v2442_v27 }
 0x2b9   : > { %1147 = vmatpush.bf16.msra.mxu1 %v1943_v29 }
 0x2ba   : > { %1840 = vmatmul.msk.bf16.vlgmr.msrb.gmra.mxu2 %vm593_vm3, %v2442_v27 }
 0x2bd   : > { %1148 = vmatpush.bf16.msra.mxu1 %v1942_v14 }
 0x2c1   : > { %1149 = vmatpush.bf16.msra.mxu1 %v1941_v30 }
 0x2c5   : > { %1150 = vmatpush.bf16.msra.mxu1 %v1940_v44 }
 0x2c9   : > { %1151 = vmatpush.bf16.msra.mxu1 %v1939_v39  ;;  %v2596_v39 = vld [vmem:[%s2882_s3 + $0x8] ss:$0 sm:$0xff] }
 0x2cd   : > { %1152 = vmatpush.bf16.msra.mxu1 %v1938_v41 }
 0x2d1   : > { %1153 = vmatpush.bf16.msra.mxu1 %v1937_v49 }
 0x2d5   : > { %1154 = vmatpush.bf16.msra.mxu1 %v1936_v59 }
 0x335   : > { %v899_v19 = vpop.f32.mrf.mxu1 }
 0x336   : > { %v928_v20 = vsel %vm635_vm4, %v899_v19, 0.0 }
 0x337   : > { %929 = vadd.xlane.f32.xlu1 %v928_v20 }
 0x33d   : > { %v924_v21 = vpop.f32.mrf.mxu2  ;;  %v901_v43 = vpop.f32.mrf.mxu1 }
 0x33e   : > { %v940_v25 = vsel %vm635_vm4, %v924_v21, 0.0 }
 0x33f   : > { %941 = vadd.xlane.f32.xlu2 %v940_v25 }
 0x345   : > { %v926_v28 = vpop.f32.mrf.mxu2 }
 0x3aa   : > { %v930_v35 = vpop.xlane.xlu1 %929 }
 0x3ab   : > { %v932_v34 = vperm.slane %v930_v35, 0  ;;  %v933_v36 = vperm.slane %v930_v35, 1  ;;  %v934_v37 = vperm.slane %v930_v35, 2  ;;  %v935_v10 = vperm.slane %v930_v35, 3 }
 0x3ad   : > { %v2570_v40 = vmul.f32 0.0009765625, %v932_v34  ;;  %v2572_v57 = vmul.f32 0.0009765625, %v933_v36  ;;  %v2574_v45 = vmul.f32 0.0009765625, %v934_v37  ;;  %v2584_v15 = vmul.f32 0.0009765625, %v935_v10 }
 0x3af   : > { %v960_v47 = vmul.f32 %v2570_v40, %v2570_v40  ;;  %v961_v48 = vmul.f32 %v2572_v57, %v2572_v57  ;;  %v962_v53 = vmul.f32 %v2574_v45, %v2574_v45  ;;  %v963_v18 = vmul.f32 %v2584_v15, %v2584_v15 }
 0x3b0   : > { %v1016_v36 = vsub.f32 %v2552_v11, %v2570_v40  ;;  %v1017_v37 = vsub.f32 %v2548_v62, %v2570_v40  ;;  %v2602_v11 = vld [vmem:[%s2882_s3 + $0x9] ss:$0 sm:$0xff]  ;;  %v1018_v49 = vsub.f32 %v2542_v24, %v2572_v57 }
 0x3b2   : > { %v942_v46 = vpop.xlane.xlu2 %941 }
 0x3b3   : > { %v944_v58 = vperm.slane %v942_v46, 0  ;;  %v945_v42 = vperm.slane %v942_v46, 1  ;;  %v946_v31 = vperm.slane %v942_v46, 2  ;;  %v947_v12 = vperm.slane %v942_v46, 3 }
 0x3b5   : > { %v956_v50 = vmul.f32 0.0009765625, %v944_v58  ;;  %v957_v2 = vmul.f32 0.0009765625, %v945_v42  ;;  %v958_v51 = vmul.f32 0.0009765625, %v946_v31  ;;  %v959_v17 = vmul.f32 0.0009765625, %v947_v12 }
 0x3b7   : > { %v964_v3 = vsub.f32 %v956_v50, %v960_v47  ;;  %v965_v56 = vsub.f32 %v957_v2, %v961_v48  ;;  %v966_v60 = vsub.f32 %v958_v51, %v962_v53  ;;  %v967_v25 = vsub.f32 %v959_v17, %v963_v18 }
 0x3b8   : > { %v1019_v50 = vsub.f32 %v2538_v22, %v2572_v57  ;;  %v2610_v51 = vstv %s1841_s9 }
 0x3b9   : > { %v968_v23 = vmax.f32 %v964_v3, 0.0  ;;  %v969_v61 = vmax.f32 %v965_v56, 0.0  ;;  %v970_v9 = vmax.f32 %v966_v60, 0.0  ;;  %v971_v44 = vmax.f32 %v967_v25, 0.0 }
 0x3ba   : > { %v1021_v25 = vsub.f32 %v2526_v54, %v2574_v45 }
 0x3bb   : > { %v972_v26 = vadd.f32 1e-05, %v968_v23  ;;  %v973_v32 = vadd.f32 1e-05, %v969_v61  ;;  %v2582_v13 = vadd.f32 1e-05, %v970_v9 }
 0x3bc   : > { %v975_v62 = vadd.f32 1e-05, %v971_v44 }
 0x3bd   : > { %2069 = vrsqrt.f32 %v972_v26  ;;  %vm982_vm12 = vweird.f32 %v972_v26  ;;  %vm992_vm15 = vweird.f32 %v973_v32  ;;  %vm1002_vm6 = vweird.f32 %v2582_v13 }
 0x3be   : > { %2071 = vrsqrt.f32 %v973_v32 }
 0x3bf   : > { %2073 = vrsqrt.f32 %v2582_v13 }
 0x3c0   : > { %2075 = vrsqrt.f32 %v975_v62 }
 0x3c3   : > { %v2070_v16 = vpop.eup %2069 }
 0x3c4   : > { %v2072_v8 = vpop.eup %2071  ;;  %v977_v19 = vmul.f32 %v2070_v16, %v972_v26  ;;  %vm983_vm11 = vweird.f32 %v2070_v16 }
 0x3c5   : > { %v987_v20 = vmul.f32 %v2072_v8, %v973_v32  ;;  %v2074_v30 = vpop.eup %2073  ;;  %vm984_vm13 = vmor %vm982_vm12, %vm983_vm11  ;;  %vm993_vm14 = vweird.f32 %v2072_v8  ;;  %vm1012_vm11 = vweird.f32 %v975_v62 }
 0x3c6   : > { %v978_v21 = vmul.f32 %v2070_v16, %v977_v19  ;;  %v997_v47 = vmul.f32 %v2074_v30, %v2582_v13  ;;  %vm994_vm0 = vmor %vm992_vm15, %vm993_vm14  ;;  %v2076_v9 = vpop.eup %2075  ;;  %vm1003_vm5 = vweird.f32 %v2074_v30 }
 0x3c7   : > { %v988_v43 = vmul.f32 %v2072_v8, %v987_v20  ;;  %vm1004_vm7 = vmor %vm1002_vm6, %vm1003_vm5  ;;  %vm1013_vm10 = vweird.f32 %v2076_v9 }
 0x3c8   : > { %v979_v28 = vmul.f32 0.5, %v978_v21  ;;  %v998_v2 = vmul.f32 %v2074_v30, %v997_v47  ;;  %vm1014_vm12 = vmor %vm1012_vm11, %vm1013_vm10  ;;  %v1022_v47 = vsub.f32 %v2524_v52, %v2584_v15 }
 0x3c9   : > { %v989_v29 = vmul.f32 0.5, %v988_v43  ;;  %v1020_v43 = vsub.f32 %v2530_v33, %v2574_v45 }
 0x3ca   : > { %v980_v14 = vsub.f32 1.5, %v979_v28  ;;  %v999_v24 = vmul.f32 0.5, %v998_v2 }
 0x3cb   : > { %v990_v35 = vsub.f32 1.5, %v989_v29 }
 0x3cc   : > { %v981_v34 = vmul.f32 %v2070_v16, %v980_v14  ;;  %v1000_v10 = vsub.f32 1.5, %v999_v24 }
 0x3cd   : > { %v991_v41 = vmul.f32 %v2072_v8, %v990_v35 }
 0x3ce   : > { %v985_v46 = vsel %vm984_vm13, %v2070_v16, %v981_v34  ;;  %v1001_v17 = vmul.f32 %v2074_v30, %v1000_v10 }
 0x3cf   : > { %v1024_v58 = vmul.f32 %v1016_v36, %v985_v46  ;;  %v1025_v42 = vmul.f32 %v1017_v37, %v985_v46  ;;  %v995_v48 = vsel %vm994_vm0, %v2072_v8, %v991_v41  ;;  %v1007_v8 = vmul.f32 %v2076_v9, %v975_v62 }
 0x3d0   : > { %v1026_v56 = vmul.f32 %v1018_v49, %v995_v48  ;;  %v1027_v59 = vmul.f32 %v1019_v50, %v995_v48  ;;  %v1005_v21 = vsel %vm1004_vm7, %v2074_v30, %v1001_v17 }
 0x3d1   : > { %v1033_v40 = vmul.f32 %v2596_v39, %v1024_v58  ;;  %v1034_v31 = vmul.f32 %v2596_v39, %v1025_v42  ;;  %v1008_v20 = vmul.f32 %v2076_v9, %v1007_v8  ;;  %v1028_v14 = vmul.f32 %v1020_v43, %v1005_v21 }
 0x3d2   : > { %v1035_v57 = vmul.f32 %v2596_v39, %v1026_v56  ;;  %v1036_v32 = vmul.f32 %v2596_v39, %v1027_v59  ;;  %v1029_v35 = vmul.f32 %v1021_v25, %v1005_v21  ;;  %v1023_v58 = vsub.f32 %v2528_v55, %v2584_v15 }
 0x3d3   : > { %v1042_v53 = vadd.f32 %v2602_v11, %v1033_v40  ;;  %v1043_v3 = vadd.f32 %v2602_v11, %v1034_v31  ;;  %v1009_v13 = vmul.f32 0.5, %v1008_v20  ;;  %v1037_v34 = vmul.f32 %v2596_v39, %v1028_v14 }
 0x3d4   : > { %v1044_v12 = vadd.f32 %v2602_v11, %v1035_v57  ;;  %v1045_v16 = vadd.f32 %v2602_v11, %v1036_v32  ;;  %v1038_v36 = vmul.f32 %v2596_v39, %v1029_v35 }
 0x3d5   : > { %vm1051_vm1 = vcmp.gt.f32.partialorder %v1042_v53, 0.0  ;;  %vm1052_vm2 = vcmp.gt.f32.partialorder %v1043_v3, 0.0  ;;  %v1060_v60 = vmul.f32 %v2610_v51, %v1042_v53  ;;  %v1061_v23 = vmul.f32 %v2610_v51, %v1043_v3 }
 0x3d6   : > { %v1062_v18 = vmul.f32 %v2610_v51, %v1044_v12  ;;  %v1063_v19 = vmul.f32 %v2610_v51, %v1045_v16  ;;  %vm1053_vm8 = vcmp.gt.f32.partialorder %v1044_v12, 0.0  ;;  %vm1054_vm9 = vcmp.gt.f32.partialorder %v1045_v16, 0.0 }
 0x3d7   : > { %v1068_v61 = vsel %vm1051_vm1, %v1042_v53, %v1060_v60  ;;  %v1069_v26 = vsel %vm1052_vm2, %v1043_v3, %v1061_v23  ;;  %v1010_v37 = vsub.f32 1.5, %v1009_v13  ;;  %v1046_v30 = vadd.f32 %v2602_v11, %v1037_v34 }
 0x3d8   : > { %v1076_v22 = vpack.c.bf16 %v1069_v26, %v1068_v61  ;;  %v1070_v28 = vsel %vm1053_vm8, %v1044_v12, %v1062_v18  ;;  %v1071_v29 = vsel %vm1054_vm9, %v1045_v16, %v1063_v19  ;;  %v1047_v41 = vadd.f32 %v2602_v11, %v1038_v36 }
 0x3d9   : > { %v1077_v44 = vpack.c.bf16 %v1071_v29, %v1070_v28  ;;  %v1011_v33 = vmul.f32 %v2076_v9, %v1010_v37  ;;  %v1064_v54 = vmul.f32 %v2610_v51, %v1046_v30  ;;  %vm1055_vm13 = vcmp.gt.f32.partialorder %v1046_v30, 0.0 }
 0x3da   : > { %1155 = vmatmul.bf16.vlgmr.msra.gmra.mxu1 %v1076_v22  ;;  %v1065_v45 = vmul.f32 %v2610_v51, %v1047_v41  ;;  %vm1056_vm14 = vcmp.gt.f32.partialorder %v1047_v41, 0.0 }
 0x3db   : > { %v1015_v46 = vsel %vm1014_vm12, %v2076_v9, %v1011_v33  ;;  %v1072_v42 = vsel %vm1055_vm13, %v1046_v30, %v1064_v54 }
 0x3dc   : > { %v1073_v40 = vsel %vm1056_vm14, %v1047_v41, %v1065_v45  ;;  %v1030_v31 = vmul.f32 %v1022_v47, %v1015_v46  ;;  %v1031_v48 = vmul.f32 %v1023_v58, %v1015_v46 }
 0x3dd   : > { %v1078_v49 = vpack.c.bf16 %v1073_v40, %v1072_v42 }
 0x3de   : > { %v1039_v62 = vmul.f32 %v2596_v39, %v1030_v31  ;;  %v1040_v50 = vmul.f32 %v2596_v39, %v1031_v48 }
 0x3e0   : > { %v1048_v2 = vadd.f32 %v2602_v11, %v1039_v62  ;;  %v1049_v53 = vadd.f32 %v2602_v11, %v1040_v50  ;;  %v2057_v11 = vld [vmem:[%s2882_s3 + $0xa] ss:$0 sm:$0xff] }
 0x3e2   : > { %v1066_v3 = vmul.f32 %v2610_v51, %v1048_v2  ;;  %v1067_v52 = vmul.f32 %v2610_v51, %v1049_v53  ;;  %vm1057_vm15 = vcmp.gt.f32.partialorder %v1048_v2, 0.0  ;;  %vm1058_vm0 = vcmp.gt.f32.partialorder %v1049_v53, 0.0 }
 0x3e4   : > { %v1074_v55 = vsel %vm1057_vm15, %v1048_v2, %v1066_v3  ;;  %v1075_v15 = vsel %vm1058_vm0, %v1049_v53, %v1067_v52 }
 0x3e5   : > { %v1079_v56 = vpack.c.bf16 %v1075_v15, %v1074_v55 }
 0x3ea   : > { %1160 = vmatmul.bf16.gmra.mxu1 %v1077_v44 }
 0x3fa   : > { %1165 = vmatmul.bf16.gmra.mxu1 %v1078_v49 }
 0x40a   : > { %1170 = vmatmul.bf16.gmra.mxu1 %v1079_v56 }
 0x457   : > { %v1156_v59 = vpop.f32.mrf.mxu1 }
 0x458   : > { %v2668_v20 = vadd.f32 %v2057_v11, %v1156_v59 }
 0x45a   : > { %v1195_v36 = vmul.f32 %v2668_v20, %v2668_v20 }
 0x45f   : > { %v1158_v60 = vpop.f32.mrf.mxu1 }
 0x460   : > { %v2662_v17 = vadd.f32 %v2057_v11, %v1158_v60 }
 0x462   : > { %v1178_v43 = vpack.c.bf16 %v2662_v17, %v2668_v20  ;;  %v1196_v44 = vmul.f32 %v2662_v17, %v2662_v17 }
 0x464   : > { %v1203_v37 = vpack.c.bf16 %v1196_v44, %v1195_v36 }
 0x467   : > { %v1161_v23 = vpop.f32.mrf.mxu1 }
 0x468   : > { %v2660_v8 = vadd.f32 %v2057_v11, %v1161_v23 }
 0x46a   : > { %v1197_v13 = vmul.f32 %v2660_v8, %v2660_v8 }
 0x46f   : > { %v1163_v24 = vpop.f32.mrf.mxu1 }
 0x470   : > { %v2656_v12 = vadd.f32 %v2057_v11, %v1163_v24 }
 0x472   : > { %v1179_v18 = vpack.c.bf16 %v2656_v12, %v2660_v8  ;;  %v1198_v14 = vmul.f32 %v2656_v12, %v2656_v12 }
 0x474   : > { %v1204_v34 = vpack.c.bf16 %v1198_v14, %v1197_v13 }
 0x477   : > { %v1166_v39 = vpop.f32.mrf.mxu1 }
 0x478   : > { %v2654_v10 = vadd.f32 %v2057_v11, %v1166_v39 }
 0x47a   : > { %v1199_v29 = vmul.f32 %v2654_v10, %v2654_v10 }
 0x47f   : > { %v1168_v61 = vpop.f32.mrf.mxu1 }
 0x480   : > { %v2650_v32 = vadd.f32 %v2057_v11, %v1168_v61 }
 0x482   : > { %v1180_v16 = vpack.c.bf16 %v2650_v32, %v2654_v10  ;;  %v1200_v25 = vmul.f32 %v2650_v32, %v2650_v32 }
 0x484   : > { %v1205_v35 = vpack.c.bf16 %v1200_v25, %v1199_v29 }
 0x487   : > { %v1171_v26 = vpop.f32.mrf.mxu1 }
 0x488   : > { %v2646_v57 = vadd.f32 %v2057_v11, %v1171_v26 }
 0x48a   : > { %v1201_v21 = vmul.f32 %v2646_v57, %v2646_v57 }
 0x48f   : > { %v1173_v22 = vpop.f32.mrf.mxu1 }
 0x490   : > { %v2648_v51 = vadd.f32 %v2057_v11, %v1173_v22 }
 0x492   : > { %v1181_v9 = vpack.c.bf16 %v2648_v51, %v2646_v57  ;;  %v1202_v19 = vmul.f32 %v2648_v51, %v2648_v51 }
 0x494   : > { %1186 = vmatpush.bf16.msra.mxu2 %v1181_v9  ;;  %v1206_v28 = vpack.c.bf16 %v1202_v19, %v1201_v21 }
 0x498   : > { %1187 = vmatpush.bf16.msra.mxu2 %v1180_v16 }
 0x49c   : > { %1188 = vmatpush.bf16.msra.mxu2 %v1179_v18 }
 0x4a0   : > { %1189 = vmatpush.bf16.msra.mxu2 %v1178_v43 }
 0x4a3   : > { %1874 = vmatmul.msk.bf16.vlgmr.msra.gmra.mxu2 %vm593_vm3, %v2442_v27 }
 0x4a4   : > { %1211 = vmatpush.bf16.msrb.mxu2 %v1206_v28 }
 0x4a8   : > { %1212 = vmatpush.bf16.msrb.mxu2 %v1205_v35  ;;  %v2711_v35 = vld [vmem:[%s2882_s3] ss:$0 sm:$0xff] }
 0x4a9   : > { %v2715_v36 = vadd.f32 %v2711_v35, %v2456_v4 }
 0x4ac   : > { %1213 = vmatpush.bf16.msrb.mxu2 %v1204_v34 }
 0x4b0   : > { %1214 = vmatpush.bf16.msrb.mxu2 %v1203_v37 }
 0x4b3   : > { %1875 = vmatmul.msk.bf16.vlgmr.msrb.gmra.mxu2 %vm593_vm3, %v2442_v27 }
 0x526   : > { %v1191_v30 = vpop.f32.mrf.mxu2 }
 0x527   : > { %v1220_v41 = vsel %vm635_vm4, %v1191_v30, 0.0 }
 0x528   : > { %1221 = vadd.xlane.f32.xlu2 %v1220_v41  ;;  %v2719_v41 = vadd.f32 %v2711_v35, %v2458_v5 }
 0x52e   : > { %v1193_v33 = vpop.f32.mrf.mxu2 }
 0x52f   : > { %v2723_v33 = vadd.f32 %v2711_v35, %v2460_v6 }
 0x536   : > { %v1216_v54 = vpop.f32.mrf.mxu2 }
 0x537   : > { %v1232_v45 = vsel %vm635_vm4, %v1216_v54, 0.0 }
 0x538   : > { %1233 = vadd.xlane.f32.xlu0 %v1232_v45 }
 0x53e   : > { %v1218_v46 = vpop.f32.mrf.mxu2 }
 0x53f   : > { %v2727_v46 = vadd.f32 %v2711_v35, %v2462_v7 }
 0x59b   : > { %v1222_v47 = vpop.xlane.xlu2 %1221 }
 0x59c   : > { %v1224_v58 = vperm.slane %v1222_v47, 0  ;;  %v1225_v42 = vperm.slane %v1222_v47, 1  ;;  %v1226_v40 = vperm.slane %v1222_v47, 2  ;;  %v1227_v31 = vperm.slane %v1222_v47, 3 }
 0x59e   : > { %v2692_v48 = vmul.f32 0.00048828125, %v1224_v58  ;;  %v2694_v49 = vmul.f32 0.00048828125, %v1225_v42  ;;  %v2696_v62 = vmul.f32 0.00048828125, %v1226_v40  ;;  %v2698_v50 = vmul.f32 0.00048828125, %v1227_v31 }
 0x5a0   : > { %v1252_v15 = vmul.f32 %v2692_v48, %v2692_v48  ;;  %v1253_v56 = vmul.f32 %v2694_v49, %v2694_v49  ;;  %v1254_v59 = vmul.f32 %v2696_v62, %v2696_v62  ;;  %v1255_v60 = vmul.f32 %v2698_v50, %v2698_v50 }
 0x5a1   : > { %v1308_v4 = vsub.f32 %v2668_v20, %v2692_v48  ;;  %v1309_v42 = vsub.f32 %v2662_v17, %v2692_v48  ;;  %v1310_v5 = vsub.f32 %v2660_v8, %v2694_v49  ;;  %v1311_v31 = vsub.f32 %v2656_v12, %v2694_v49 }
 0x5a2   : > { %v1312_v7 = vsub.f32 %v2654_v10, %v2696_v62  ;;  %v1313_v20 = vsub.f32 %v2650_v32, %v2696_v62  ;;  %v1314_v17 = vsub.f32 %v2646_v57, %v2698_v50  ;;  %v2058_v10 = vld [vmem:[%s2882_s3 + $0xb] ss:$0 sm:$0xff] }
 0x5ab   : > { %v1234_v2 = vpop.xlane.xlu0 %1233 }
 0x5ac   : > { %v1236_v53 = vperm.slane %v1234_v2, 0  ;;  %v1237_v3 = vperm.slane %v1234_v2, 1  ;;  %v1238_v52 = vperm.slane %v1234_v2, 2  ;;  %v1239_v55 = vperm.slane %v1234_v2, 3 }
 0x5ae   : > { %v1248_v23 = vmul.f32 0.00048828125, %v1236_v53  ;;  %v1249_v24 = vmul.f32 0.00048828125, %v1237_v3  ;;  %v1250_v39 = vmul.f32 0.00048828125, %v1238_v52  ;;  %v1251_v61 = vmul.f32 0.00048828125, %v1239_v55 }
 0x5b0   : > { %v1256_v26 = vsub.f32 %v1248_v23, %v1252_v15  ;;  %v1257_v11 = vsub.f32 %v1249_v24, %v1253_v56  ;;  %v1258_v22 = vsub.f32 %v1250_v39, %v1254_v59  ;;  %v1259_v9 = vsub.f32 %v1251_v61, %v1255_v60 }
 0x5b1   : > { %v1315_v23 = vsub.f32 %v2648_v51, %v2698_v50 }
 0x5b2   : > { %v1260_v16 = vmax.f32 %v1256_v26, 0.0  ;;  %v1261_v18 = vmax.f32 %v1257_v11, 0.0  ;;  %v1262_v19 = vmax.f32 %v1258_v22, 0.0  ;;  %v1263_v21 = vmax.f32 %v1259_v9, 0.0  ;;  %v2059_v26 = vld [vmem:[%s2882_s3 + $0xc] ss:$0 sm:$0xff] }
 0x5b4   : > { %v1264_v43 = vadd.f32 1e-05, %v1260_v16  ;;  %v1265_v25 = vadd.f32 1e-05, %v1261_v18  ;;  %v1266_v28 = vadd.f32 1e-05, %v1262_v19 }
 0x5b5   : > { %v1267_v29 = vadd.f32 1e-05, %v1263_v21 }
 0x5b6   : > { %2077 = vrsqrt.f32 %v1264_v43  ;;  %vm1274_vm5 = vweird.f32 %v1264_v43  ;;  %vm1284_vm8 = vweird.f32 %v1265_v25  ;;  %vm1294_vm11 = vweird.f32 %v1266_v28 }
 0x5b7   : > { %2079 = vrsqrt.f32 %v1265_v25  ;;  %vm1304_vm12 = vweird.f32 %v1267_v29 }
 0x5b8   : > { %2081 = vrsqrt.f32 %v1266_v28 }
 0x5b9   : > { %2083 = vrsqrt.f32 %v1267_v29 }
 0x5bc   : > { %v2078_v14 = vpop.eup %2077 }
 0x5bd   : > { %v2080_v13 = vpop.eup %2079  ;;  %v1269_v44 = vmul.f32 %v2078_v14, %v1264_v43  ;;  %vm1275_vm1 = vweird.f32 %v2078_v14 }
 0x5be   : > { %v2082_v34 = vpop.eup %2081  ;;  %v1279_v37 = vmul.f32 %v2080_v13, %v1265_v25  ;;  %vm1285_vm2 = vweird.f32 %v2080_v13  ;;  %vm1276_vm7 = vmor %vm1274_vm5, %vm1275_vm1  ;;  %v1351_v25 = vstv %s2743_s23  ;;  %s1631_s23 = scalar_lea.sflag [#allocation4], %s263_s7 }
 0x5bf   : > { %v2084_v30 = vpop.eup %2083  ;;  %v1270_v54 = vmul.f32 %v2078_v14, %v1269_v44  ;;  %v1289_v45 = vmul.f32 %v2082_v34, %v1266_v28  ;;  %vm1295_vm6 = vweird.f32 %v2082_v34  ;;  %vm1286_vm10 = vmor %vm1284_vm8, %vm1285_vm2 }
 0x5c0   : > { %v1280_v47 = vmul.f32 %v2080_v13, %v1279_v37  ;;  %v1299_v58 = vmul.f32 %v2084_v30, %v1267_v29  ;;  %vm1305_vm9 = vweird.f32 %v2084_v30  ;;  %vm1296_vm13 = vmor %vm1294_vm11, %vm1295_vm6 }
 0x5c1   : > { %v1271_v40 = vmul.f32 0.5, %v1270_v54  ;;  %v1290_v6 = vmul.f32 %v2082_v34, %v1289_v45  ;;  %vm1306_vm14 = vmor %vm1304_vm12, %vm1305_vm9 }
 0x5c2   : > { %v1281_v2 = vmul.f32 0.5, %v1280_v47  ;;  %v1300_v53 = vmul.f32 %v2084_v30, %v1299_v58 }
 0x5c3   : > { %v1272_v3 = vsub.f32 1.5, %v1271_v40  ;;  %v1291_v52 = vmul.f32 0.5, %v1290_v6 }
 0x5c4   : > { %v1282_v8 = vsub.f32 1.5, %v1281_v2  ;;  %v1301_v48 = vmul.f32 0.5, %v1300_v53 }
 0x5c5   : > { %v1273_v12 = vmul.f32 %v2078_v14, %v1272_v3  ;;  %v1292_v49 = vsub.f32 1.5, %v1291_v52 }
 0x5c6   : > { %v1283_v32 = vmul.f32 %v2080_v13, %v1282_v8  ;;  %v1302_v62 = vsub.f32 1.5, %v1301_v48  ;;  %v413_v8 = vadd.f32 %v2711_v35, %v2452_v0  ;;  %v415_v48 = vadd.f32 %v2711_v35, %v2454_v1 }
 0x5c7   : > { %v1277_v55 = vsel %vm1276_vm7, %v2078_v14, %v1273_v12  ;;  %v1293_v57 = vmul.f32 %v2082_v34, %v1292_v49 }
 0x5c8   : > { %v1287_v15 = vsel %vm1286_vm10, %v2080_v13, %v1283_v32  ;;  %v1303_v56 = vmul.f32 %v2084_v30, %v1302_v62  ;;  %v1316_v59 = vmul.f32 %v1308_v4, %v1277_v55  ;;  %v1317_v60 = vmul.f32 %v1309_v42, %v1277_v55 }
 0x5c9   : > { %v1297_v24 = vsel %vm1296_vm13, %v2082_v34, %v1293_v57  ;;  %v1318_v39 = vmul.f32 %v1310_v5, %v1287_v15  ;;  %v1319_v61 = vmul.f32 %v1311_v31, %v1287_v15  ;;  %v408_v15 = vadd.f32 %v2711_v35, %v2448_v38 }
 0x5ca   : > { %v1307_v11 = vsel %vm1306_vm14, %v2084_v30, %v1303_v56  ;;  %v1320_v22 = vmul.f32 %v1312_v7, %v1297_v24  ;;  %v1321_v9 = vmul.f32 %v1313_v20, %v1297_v24  ;;  %v1325_v16 = vmul.f32 %v2058_v10, %v1316_v59 }
 0x5cb   : > { %v1322_v18 = vmul.f32 %v1314_v17, %v1307_v11  ;;  %v1323_v19 = vmul.f32 %v1315_v23, %v1307_v11  ;;  %v1327_v21 = vmul.f32 %v2058_v10, %v1318_v39  ;;  %v1328_v43 = vmul.f32 %v2058_v10, %v1319_v61 }
 0x5cc   : > { %v1329_v28 = vmul.f32 %v2058_v10, %v1320_v22  ;;  %v1330_v29 = vmul.f32 %v2058_v10, %v1321_v9  ;;  %v1326_v51 = vmul.f32 %v2058_v10, %v1317_v60  ;;  %v1334_v54 = vadd.f32 %v2059_v26, %v1325_v16 }
 0x5cd   : > { %v1331_v50 = vmul.f32 %v2058_v10, %v1322_v18  ;;  %v1332_v14 = vmul.f32 %v2058_v10, %v1323_v19  ;;  %v1336_v13 = vadd.f32 %v2059_v26, %v1327_v21  ;;  %v1337_v44 = vadd.f32 %v2059_v26, %v1328_v43 }
 0x5ce   : > { %v1338_v34 = vadd.f32 %v2059_v26, %v1329_v28  ;;  %v1339_v37 = vadd.f32 %v2059_v26, %v1330_v29  ;;  %v1335_v45 = vadd.f32 %v2059_v26, %v1326_v51  ;;  %vm1343_vm7 = vcmp.gt.f32.partialorder %v1334_v54, 0.0  ;;  %v1951_v28 = vld [vmem:[#allocation2 + $0xf8] sm:$0xff]  ;;  %v1950_v29 = vld [vmem:[#allocation2 + $0xf0] sm:$0xff]  ;;  %v1949_v51 = vld [vmem:[#allocation2 + $0xe8] sm:$0xff] }
 0x5cf   : > { %v1340_v30 = vadd.f32 %v2059_v26, %v1331_v50  ;;  %v1341_v4 = vadd.f32 %v2059_v26, %v1332_v14  ;;  %vm1345_vm15 = vcmp.gt.f32.partialorder %v1336_v13, 0.0  ;;  %vm1346_vm0 = vcmp.gt.f32.partialorder %v1337_v44, 0.0  ;;  %1593 = vmatpush.bf16.msrb.mxu3 %v1951_v28  ;;  %v1948_v50 = vld [vmem:[#allocation2 + $0xe0] sm:$0xff]  ;;  %v1947_v14 = vld [vmem:[#allocation2 + $0xd8] sm:$0xff] }
 0x5d0   : > { %vm1347_vm1 = vcmp.gt.f32.partialorder %v1338_v34, 0.0  ;;  %vm1348_vm2 = vcmp.gt.f32.partialorder %v1339_v37, 0.0  ;;  %v1356_v47 = vmul.f32 %v1351_v25, %v1338_v34  ;;  %v1357_v58 = vmul.f32 %v1351_v25, %v1339_v37 }
 0x5d1   : > { %vm1349_vm5 = vcmp.gt.f32.partialorder %v1340_v30, 0.0  ;;  %vm1350_vm6 = vcmp.gt.f32.partialorder %v1341_v4, 0.0  ;;  %v1358_v42 = vmul.f32 %v1351_v25, %v1340_v30  ;;  %v1359_v5 = vmul.f32 %v1351_v25, %v1341_v4 }
 0x5d2   : > { %v1364_v40 = vsel %vm1347_vm1, %v1338_v34, %v1356_v47  ;;  %v1365_v6 = vsel %vm1348_vm2, %v1339_v37, %v1357_v58  ;;  %v1354_v31 = vmul.f32 %v1351_v25, %v1336_v13  ;;  %v1355_v7 = vmul.f32 %v1351_v25, %v1337_v44  ;;  %v1945_v37 = vld [vmem:[#allocation2 + $0xc8] sm:$0xff] }
 0x5d3   : > { %v1366_v2 = vsel %vm1349_vm5, %v1340_v30, %v1358_v42  ;;  %v1367_v53 = vsel %vm1350_vm6, %v1341_v4, %v1359_v5  ;;  %v2755_v20 = vadd.f32 %v1364_v40, %v2715_v36  ;;  %v2758_v3 = vadd.f32 %v1365_v6, %v2719_v41  ;;  %1594 = vmatpush.bf16.msrb.mxu3 %v1950_v29  ;;  %v1944_v5 = vld [vmem:[#allocation2 + $0xc0] sm:$0xff] }
 0x5d4   : > { %v2761_v52 = vadd.f32 %v1366_v2, %v2723_v33  ;;  %v2764_v17 = vadd.f32 %v1367_v53, %v2727_v46  ;;  %v1362_v12 = vsel %vm1345_vm15, %v1336_v13, %v1354_v31  ;;  %v1363_v36 = vsel %vm1346_vm0, %v1337_v44, %v1355_v7 }
 0x5d5   : > { %v1397_v0 = vmul.f32 %v2755_v20, %v2755_v20  ;;  %v1398_v1 = vmul.f32 %v2758_v3, %v2758_v3  ;;  %vm1344_vm8 = vcmp.gt.f32.partialorder %v1335_v45, 0.0  ;;  %v1352_v49 = vmul.f32 %v1351_v25, %v1334_v54 }
 0x5d6   : > { %v1379_v41 = vpack.c.bf16 %v2764_v17, %v2761_v52  ;;  %v1399_v33 = vmul.f32 %v2761_v52, %v2761_v52  ;;  %v1400_v46 = vmul.f32 %v2764_v17, %v2764_v17  ;;  %v2782_v32 = vadd.f32 %v1362_v12, %v413_v8 }
 0x5d7   : > { %v2784_v62 = vadd.f32 %v1363_v36, %v415_v48  ;;  %v1353_v55 = vmul.f32 %v1351_v25, %v1335_v45  ;;  %v1360_v57 = vsel %vm1343_vm7, %v1334_v54, %v1352_v49  ;;  %v410_v56 = vadd.f32 %v2711_v35, %v2450_v63  ;;  %1595 = vmatpush.bf16.msrb.mxu3 %v1949_v51 }
 0x5d8   : > { %1384 = vmatpush.bf16.msra.mxu2 %v1379_v41  ;;  %v1404_v10 = vpack.c.bf16 %v1400_v46, %v1399_v33  ;;  %v1378_v59 = vpack.c.bf16 %v2758_v3, %v2755_v20  ;;  %v1403_v23 = vpack.c.bf16 %v1398_v1, %v1397_v0  ;;  %v1395_v24 = vmul.f32 %v2782_v32, %v2782_v32 }
 0x5d9   : > { %v1361_v60 = vsel %vm1344_vm8, %v1335_v45, %v1353_v55  ;;  %v1396_v39 = vmul.f32 %v2784_v62, %v2784_v62  ;;  %v2796_v61 = vadd.f32 %v1360_v57, %v408_v15  ;;  %v1377_v38 = vpack.c.bf16 %v2784_v62, %v2782_v32 }
 0x5da   : > { %1409 = vmatpush.bf16.msra.mxu0 %v1404_v10  ;;  %v2798_v26 = vadd.f32 %v1361_v60, %v410_v56 }
 0x5db   : > { %v1402_v63 = vpack.c.bf16 %v1396_v39, %v1395_v24  ;;  %v1393_v35 = vmul.f32 %v2796_v61, %v2796_v61  ;;  %1596 = vmatpush.bf16.msrb.mxu3 %v1948_v50 }
 0x5dc   : > { %1385 = vmatpush.bf16.msra.mxu2 %v1378_v59  ;;  %v1394_v11 = vmul.f32 %v2798_v26, %v2798_v26  ;;  %v1376_v22 = vpack.c.bf16 %v2798_v26, %v2796_v61 }
 0x5de   : > { %1410 = vmatpush.bf16.msra.mxu0 %v1403_v23  ;;  %v1401_v9 = vpack.c.bf16 %v1394_v11, %v1393_v35 }
 0x5df   : > { %1597 = vmatpush.bf16.msrb.mxu3 %v1947_v14 }
 0x5e0   : > { %1386 = vmatpush.bf16.msra.mxu2 %v1377_v38 }
 0x5e2   : > { %1411 = vmatpush.bf16.msra.mxu0 %v1402_v63 }
 0x5e4   : > { %1387 = vmatpush.bf16.msra.mxu2 %v1376_v22 }
 0x5e6   : > { %1412 = vmatpush.bf16.msra.mxu0 %v1401_v9 }
 0x5e7   : > { %1877 = vmatmul.msk.bf16.vlgmr.msra.gmra.mxu2 %vm593_vm3, %v2442_v27 }
 0x5e9   : > { %1878 = vmatmul.msk.bf16.vlgmr.msra.gmra.mxu0 %vm593_vm3, %v2442_v27  ;;  %v1946_v27 = vld [vmem:[#allocation2 + $0xd0] sm:$0xff] }
 0x5ea   : > { %1598 = vmatpush.bf16.msrb.mxu3 %v1946_v27 }
 0x5ee   : > { %1599 = vmatpush.bf16.msrb.mxu3 %v1945_v37 }
 0x5f2   : > { %1600 = vmatpush.bf16.msrb.mxu3 %v1944_v5 }
 0x666   : > { %v1414_v16 = vpop.f32.mrf.mxu0 }
 0x667   : > { %v1430_v18 = vsel %vm635_vm4, %v1414_v16, 0.0 }
 0x668   : > { %1431 = vadd.xlane.f32.xlu2 %v1430_v18 }
 0x66a   : > { %v1389_v19 = vpop.f32.mrf.mxu2 }
 0x66b   : > { %v1418_v21 = vsel %vm635_vm4, %v1389_v19, 0.0 }
 0x66c   : > { %1419 = vadd.xlane.f32.xlu1 %v1418_v21 }
 0x66e   : > { %v1416_v43 = vpop.f32.mrf.mxu0 }
 0x672   : > { %v1391_v25 = vpop.f32.mrf.mxu2 }
 0x6db   : > { %v1432_v13 = vpop.xlane.xlu2 %1431 }
 0x6dc   : > { %v1434_v44 = vperm.slane %v1432_v13, 0  ;;  %v1435_v34 = vperm.slane %v1432_v13, 1  ;;  %v1436_v8 = vperm.slane %v1432_v13, 2  ;;  %v1437_v59 = vperm.slane %v1432_v13, 3 }
 0x6de   : > { %v1446_v58 = vmul.f32 0.00048828125, %v1434_v44  ;;  %v1447_v42 = vmul.f32 0.00048828125, %v1435_v34  ;;  %v1448_v33 = vmul.f32 0.00048828125, %v1436_v8  ;;  %v1449_v63 = vmul.f32 0.00048828125, %v1437_v59 }
 0x6df   : > { %v1420_v54 = vpop.xlane.xlu1 %1419 }
 0x6e0   : > { %v1422_v45 = vperm.slane %v1420_v54, 0  ;;  %v1423_v30 = vperm.slane %v1420_v54, 1  ;;  %v1424_v40 = vperm.slane %v1420_v54, 2  ;;  %v1425_v55 = vperm.slane %v1420_v54, 3 }
 0x6e2   : > { %v1442_v4 = vmul.f32 0.00048828125, %v1422_v45  ;;  %v2814_v47 = vmul.f32 0.00048828125, %v1423_v30  ;;  %v2818_v53 = vmul.f32 0.00048828125, %v1424_v40  ;;  %v2822_v23 = vmul.f32 0.00048828125, %v1425_v55 }
 0x6e4   : > { %v1450_v6 = vmul.f32 %v1442_v4, %v1442_v4  ;;  %v1451_v31 = vmul.f32 %v2814_v47, %v2814_v47  ;;  %v1452_v46 = vmul.f32 %v2818_v53, %v2818_v53  ;;  %v1453_v11 = vmul.f32 %v2822_v23, %v2822_v23 }
 0x6e5   : > { %v1506_v22 = vsub.f32 %v2796_v61, %v1442_v4  ;;  %v1507_v9 = vsub.f32 %v2798_v26, %v1442_v4  ;;  %v1508_v26 = vsub.f32 %v2782_v32, %v2814_v47  ;;  %v1509_v44 = vsub.f32 %v2784_v62, %v2814_v47 }
 0x6e6   : > { %v1454_v7 = vsub.f32 %v1446_v58, %v1450_v6  ;;  %v1455_v2 = vsub.f32 %v1447_v42, %v1451_v31  ;;  %v1456_v0 = vsub.f32 %v1448_v33, %v1452_v46  ;;  %v1457_v43 = vsub.f32 %v1449_v63, %v1453_v11 }
 0x6e7   : > { %v1510_v32 = vsub.f32 %v2755_v20, %v2818_v53  ;;  %v1511_v62 = vsub.f32 %v2758_v3, %v2818_v53  ;;  %v1513_v20 = vsub.f32 %v2764_v17, %v2822_v23 }
 0x6e8   : > { %v1458_v48 = vmax.f32 %v1454_v7, 0.0  ;;  %v1459_v12 = vmax.f32 %v1455_v2, 0.0  ;;  %v1460_v57 = vmax.f32 %v1456_v0, 0.0  ;;  %v1461_v51 = vmax.f32 %v1457_v43, 0.0 }
 0x6ea   : > { %v1462_v36 = vadd.f32 1e-05, %v1458_v48  ;;  %v1463_v41 = vadd.f32 1e-05, %v1459_v12  ;;  %v1464_v24 = vadd.f32 1e-05, %v1460_v57  ;;  %v1512_v12 = vsub.f32 %v2761_v52, %v2822_v23 }
 0x6eb   : > { %v1465_v27 = vadd.f32 1e-05, %v1461_v51 }
 0x6ec   : > { %2085 = vrsqrt.f32 %v1462_v36  ;;  %vm1472_vm4 = vweird.f32 %v1462_v36  ;;  %vm1482_vm11 = vweird.f32 %v1463_v41  ;;  %vm1492_vm14 = vweird.f32 %v1464_v24 }
 0x6ed   : > { %2087 = vrsqrt.f32 %v1463_v41  ;;  %vm1502_vm1 = vweird.f32 %v1465_v27 }
 0x6ee   : > { %2089 = vrsqrt.f32 %v1464_v24 }
 0x6ef   : > { %2091 = vrsqrt.f32 %v1465_v27 }
 0x6f2   : > { %v2086_v1 = vpop.eup %2085 }
 0x6f3   : > { %v2088_v49 = vpop.eup %2087  ;;  %v1467_v10 = vmul.f32 %v2086_v1, %v1462_v36  ;;  %vm1473_vm3 = vweird.f32 %v2086_v1 }
 0x6f4   : > { %v1477_v56 = vmul.f32 %v2088_v49, %v1463_v41  ;;  %vm1474_vm9 = vmor %vm1472_vm4, %vm1473_vm3  ;;  %v2090_v29 = vpop.eup %2089  ;;  %vm1483_vm10 = vweird.f32 %v2088_v49  ;;  %v2060_v41 = vld [vmem:[%s2882_s3 + $0xd] ss:$0 sm:$0xff] }
 0x6f5   : > { %v1468_v15 = vmul.f32 %v2086_v1, %v1467_v10  ;;  %v1487_v50 = vmul.f32 %v2090_v29, %v1464_v24  ;;  %vm1484_vm12 = vmor %vm1482_vm11, %vm1483_vm10  ;;  %v2092_v4 = vpop.eup %2091  ;;  %vm1493_vm13 = vweird.f32 %v2090_v29 }
 0x6f6   : > { %v1478_v38 = vmul.f32 %v2088_v49, %v1477_v56  ;;  %v1497_v58 = vmul.f32 %v2092_v4, %v1465_v27  ;;  %vm1494_vm15 = vmor %vm1492_vm14, %vm1493_vm13  ;;  %vm1503_vm0 = vweird.f32 %v2092_v4 }
 0x6f7   : > { %v1469_v60 = vmul.f32 0.5, %v1468_v15  ;;  %v1488_v61 = vmul.f32 %v2090_v29, %v1487_v50  ;;  %vm1504_vm2 = vmor %vm1502_vm1, %vm1503_vm0 }
 0x6f8   : > { %v1479_v18 = vmul.f32 0.5, %v1478_v38  ;;  %v1498_v40 = vmul.f32 %v2092_v4, %v1497_v58 }
 0x6f9   : > { %v1470_v39 = vsub.f32 1.5, %v1469_v60  ;;  %v1489_v54 = vmul.f32 0.5, %v1488_v61 }
 0x6fa   : > { %v1480_v28 = vsub.f32 1.5, %v1479_v18  ;;  %v1499_v31 = vmul.f32 0.5, %v1498_v40 }
 0x6fb   : > { %v1471_v35 = vmul.f32 %v2086_v1, %v1470_v39  ;;  %v1490_v30 = vsub.f32 1.5, %v1489_v54 }
 0x6fc   : > { %v1481_v14 = vmul.f32 %v2088_v49, %v1480_v28  ;;  %v1500_v2 = vsub.f32 1.5, %v1499_v31 }
 0x6fd   : > { %v1475_v16 = vsel %vm1474_vm9, %v2086_v1, %v1471_v35  ;;  %v1491_v42 = vmul.f32 %v2090_v29, %v1490_v30 }
 0x6fe   : > { %v1514_v19 = vmul.f32 %v1506_v22, %v1475_v16  ;;  %v1515_v21 = vmul.f32 %v1507_v9, %v1475_v16  ;;  %v1485_v13 = vsel %vm1484_vm12, %v2088_v49, %v1481_v14  ;;  %v1501_v8 = vmul.f32 %v2092_v4, %v1500_v2 }
 0x6ff   : > { %v1516_v34 = vmul.f32 %v1508_v26, %v1485_v13  ;;  %v1517_v37 = vmul.f32 %v1509_v44, %v1485_v13  ;;  %v1495_v5 = vsel %vm1494_vm15, %v2090_v29, %v1491_v42 }
 0x700   : > { %v1522_v25 = vpack.c.bf16 %v1515_v21, %v1514_v19  ;;  %v1518_v47 = vmul.f32 %v1510_v32, %v1495_v5  ;;  %v1519_v6 = vmul.f32 %v1511_v62, %v1495_v5  ;;  %v1505_v48 = vsel %vm1504_vm2, %v2092_v4, %v1501_v8 }
 0x701   : > { %v1523_v45 = vpack.c.bf16 %v1517_v37, %v1516_v34  ;;  %v1520_v3 = vmul.f32 %v1512_v12, %v1505_v48  ;;  %v1521_v53 = vmul.f32 %v1513_v20, %v1505_v48 }
 0x702   : > { %1601 = vmatmul.bf16.vlgmr.msrb.gmra.mxu3 %v1522_v25  ;;  %v1524_v7 = vpack.c.bf16 %v1519_v6, %v1518_v47 }
 0x703   : > { %v1525_v36 = vpack.c.bf16 %v1521_v53, %v1520_v3 }
 0x712   : > { %1606 = vmatmul.bf16.gmra.mxu3 %v1523_v45 }
 0x722   : > { %1611 = vmatmul.bf16.gmra.mxu3 %v1524_v7 }
 0x732   : > { %1616 = vmatmul.bf16.gmra.mxu3 %v1525_v36 }
 0x785   : > { %v1602_v33 = vpop.f32.mrf.mxu3 }
 0x786   : > { %v1603_v46 = vadd.f32 %v2060_v41, %v1602_v33 }
 0x788   : > { %1622 = vst [vmem:[%s265_s11] sm:$0xff] %v1603_v46 }
 0x78d   : > { %v1604_v0 = vpop.f32.mrf.mxu3 }
 0x78e   : > { %v1605_v52 = vadd.f32 %v2060_v41, %v1604_v0 }
 0x790   : > { %1623 = vst [vmem:[%s265_s11 + $0x8] sm:$0xff] %v1605_v52 }
 0x795   : > { %v1607_v17 = vpop.f32.mrf.mxu3 }
 0x796   : > { %v1608_v1 = vadd.f32 %v2060_v41, %v1607_v17 }
 0x798   : > { %1624 = vst [vmem:[%s265_s11 + $0x10] sm:$0xff] %v1608_v1 }
 0x79d   : > { %v1609_v49 = vpop.f32.mrf.mxu3 }
 0x79e   : > { %v1610_v10 = vadd.f32 %v2060_v41, %v1609_v49 }
 0x7a0   : > { %1625 = vst [vmem:[%s265_s11 + $0x18] sm:$0xff] %v1610_v10 }
 0x7a5   : > { %v1612_v55 = vpop.f32.mrf.mxu3 }
 0x7a6   : > { %v1613_v57 = vadd.f32 %v2060_v41, %v1612_v55 }
 0x7a8   : > { %1626 = vst [vmem:[%s265_s11 + $0x20] sm:$0xff] %v1613_v57 }
 0x7ad   : > { %v1614_v15 = vpop.f32.mrf.mxu3 }
 0x7ae   : > { %v1615_v56 = vadd.f32 %v2060_v41, %v1614_v15 }
 0x7b0   : > { %1627 = vst [vmem:[%s265_s11 + $0x28] sm:$0xff] %v1615_v56 }
 0x7b5   : > { %v1617_v59 = vpop.f32.mrf.mxu3 }
 0x7b6   : > { %v1618_v60 = vadd.f32 %v2060_v41, %v1617_v59 }
 0x7b8   : > { %1628 = vst [vmem:[%s265_s11 + $0x30] sm:$0xff] %v1618_v60 }
 0x7bd   : > { %v1619_v23 = vpop.f32.mrf.mxu3 }
 0x7be   : > { %v1620_v24 = vadd.f32 %v2060_v41, %v1619_v23 }
 0x7c0   : > { %1629 = vst [vmem:[%s265_s11 + $0x38] sm:$0xff] %v1620_v24 }
 0x7c1   : > { %2165 = shalt.err (!%p2162_p8)
}
 0x7c2   : > { %s2218_s7 = smov 128   ;;  %s2219_s10 = smov 8  }
 0x7c3   : > { %1969 = dma.vmem_to_hbm [thread:$0]  (%p2288_p5), %s1644_s16, 1024, %s1646_s17, %s1631_s23, %s2218_s7, %s2218_s7, %s2219_s10  }
 0x7c4 PF: > { %p1986_p9 = scmp.ge.s32.totalorder %s2208_s21, 2  ;;  %s1660_s11 = sand.u32 1, %s2196_s18  }
 0x7c5   : > { %s1661_s12 = scalar_lea.sflag [#allocation4], %s1660_s11 }
 0x7c6   : > { %p1979_p10 = pnand %p1986_p9, %p2292_p6 }
 0x7c8   : > { %p1980_p11 = pneg %p1979_p10 }
 0x7ca   : > { %2191 = dma.done.wait (%p1980_p11), %s1661_s12, 1024  }
 0x7cb   : > { %2193 = vsyncadd (%p1980_p11), %s1661_s12, 4294966272  ;;  %p17_p12 = scmp.ge.s32.totalorder %s2275_s24, 4   ;;  %s2888_s18 = smov %s2200_s19 }
 0x7cc   : > { %s2889_s19 = smov %s2204_s20  ;;  %s2890_s20 = smov %s2286_s27 }
 0x7cd   : > { %s2891_s21 = smov %s2275_s24  ;;  %19 = sbr.rel (!%p17_p12) target bundleno = 5 (0x5), region = 91 }
 0x7d2   :  { %1667 = vsyncpa [#allocation3], 1 }
 0x7d3   :  { %1669 = vsyncpa [#allocation3 + $0x1], 1 }
 0x7d4   :  { %1670 = vsyncpa [#allocation4], 1 }
 0x7d5   :  { %1672 = vsyncpa [#allocation4 + $0x1], 1 }
 0x7d6   :  { %1673 = vsyncpa [#allocation5], 1 }
 0x7d7   :  { %1675 = vsyncpa [#allocation5 + $0x1], 1 }

</bundles_post_ra>
